<compile_context>
chip_gen: v5e
topology: v5e:2x2
jax: 0.10.0
libtpu: 0.0.40
codegen_flags: <defaults>
</compile_context>

<pallas_src>
import math
from functools import partial

import numpy as np
import jax
import jax.numpy as jnp
from jax.experimental import pallas as pl
from jax.experimental.pallas import tpu as pltpu


# ----------------------------------------------------------------------------
# Fused Pallas kernel: qkv projection + RPE attention + output projection
# ----------------------------------------------------------------------------
def _fused_mha_rpe_kernel(x_ref, w_in_ref, b_in_ref, wo_ref, bo_ref, bias_ref,
                          out_ref, q_out_ref, k_out_ref, *, num_heads, head_dim):
    E = num_heads * head_dim

    # x: (L, 3E) = [query | key | value] features for this batch element.
    x = x_ref[0]

    # Fused block-diagonal projection: (L, 3E) @ (3E, 3E) -> (L, 3E)
    # columns [0:E)   = q * scaling   (scaling folded into the weights/bias)
    # columns [E:2E)  = k
    # columns [2E:3E) = v
    qkv = (jnp.dot(x, w_in_ref[...], preferred_element_type=jnp.float32)
           + b_in_ref[...])

    head_out = []
    for h in range(num_heads):                       # H is tiny -> unrolled
        lo = h * head_dim
        hi = lo + head_dim
        qh = qkv[:, lo:hi]                           # (L, Dh), already scaled
        kh = qkv[:, E + lo:E + hi]                   # (L, Dh)
        vh = qkv[:, 2 * E + lo:2 * E + hi]           # (L, Dh)

        # module returns (attn_output, q, k) -> emit per-head q / k
        q_out_ref[0, h, :, :] = qh
        k_out_ref[0, h, :, :] = kh

        # scores + relative position bias, numerically stable softmax
        s = jnp.dot(qh, kh.T, preferred_element_type=jnp.float32) + bias_ref[h]
        s = s - jnp.max(s, axis=-1, keepdims=True)
        p = jnp.exp(s)
        p = p * pl.reciprocal(jnp.sum(p, axis=-1, keepdims=True), approx=True)
        # dropout_p == 0.0 -> identity (module default)

        head_out.append(jnp.dot(p, vh, preferred_element_type=jnp.float32))

    attn = jnp.concatenate(head_out, axis=-1)        # (L, E), heads on lanes
    out_ref[0] = (jnp.dot(attn, wo_ref[...], preferred_element_type=jnp.float32)
                  + bo_ref[...])


def _fused_mha_rpe(x_cat, w_in, b_in, wo_t, bo, rpe_bias, *, num_heads, head_dim):
    """x_cat: (B, L, 3E) batch-major concat of [query|key|value] features."""
    B, L, E3 = x_cat.shape
    E = num_heads * head_dim
    assert E3 == 3 * E

    kernel = partial(_fused_mha_rpe_kernel, num_heads=num_heads, head_dim=head_dim)
    return pl.pallas_call(
        kernel,
        out_shape=(
            jax.ShapeDtypeStruct((B, L, E), jnp.float32),                   # out
            jax.ShapeDtypeStruct((B, num_heads, L, head_dim), jnp.float32), # q
            jax.ShapeDtypeStruct((B, num_heads, L, head_dim), jnp.float32), # k
        ),
        grid=(B,),
        in_specs=[
            pl.BlockSpec((1, L, E3), lambda b: (b, 0, 0)),          # x_cat
            pl.BlockSpec((E3, E3), lambda b: (0, 0)),               # w_in
            pl.BlockSpec((1, E3), lambda b: (0, 0)),                # b_in
            pl.BlockSpec((E, E), lambda b: (0, 0)),                 # wo_t
            pl.BlockSpec((1, E), lambda b: (0, 0)),                 # bo
            pl.BlockSpec((num_heads, L, L), lambda b: (0, 0, 0)),   # rpe bias
        ],
        out_specs=(
            pl.BlockSpec((1, L, E), lambda b: (b, 0, 0)),
            pl.BlockSpec((1, num_heads, L, head_dim), lambda b: (b, 0, 0, 0)),
            pl.BlockSpec((1, num_heads, L, head_dim), lambda b: (b, 0, 0, 0)),
        ),
        compiler_params=pltpu.CompilerParams(
            dimension_semantics=("parallel",)),      # v7x: one batch per TC
    )(x_cat, w_in, b_in, wo_t, bo, rpe_bias)


@partial(jax.jit, static_argnames=("num_heads", "head_dim"))
def mha_rpe_forward(query, key, value, w_in, b_in, wo_t, bo, rpe_bias,
                    *, num_heads, head_dim):
    L, B, E = query.shape
    # Concatenate along features so the block-diagonal weight projects q/k/v in a
    # single matmul, and make batch major so the kernel grid can block over it.
    x_cat = jnp.transpose(jnp.concatenate([query, key, value], axis=-1), (1, 0, 2))
    out_ble, q_bhld, k_bhld = _fused_mha_rpe(
        x_cat, w_in, b_in, wo_t, bo, rpe_bias,
        num_heads=num_heads, head_dim=head_dim)
    out = jnp.transpose(out_ble, (1, 0, 2))                      # (L, B, E)
    q_bh = q_bhld.reshape(B * num_heads, L, head_dim)            # (B*H, L, Dh)
    k_bh = k_bhld.reshape(B * num_heads, L, head_dim)
    return out, q_bh, k_bh


# ----------------------------------------------------------------------------
# Module (parameters + static precompute + forward glue)
# ----------------------------------------------------------------------------
class MultiheadAttentionRPEPallas:
    def __init__(self, embed_dim, num_heads, window_size=7, seed=0):
        assert embed_dim % num_heads == 0
        self.embed_dim = embed_dim
        self.num_heads = num_heads
        self.head_dim = embed_dim // num_heads
        self.window_size = (window_size, window_size)
        scaling = float(self.head_dim) ** -0.5

        key = jax.random.PRNGKey(seed)
        ks = jax.random.split(key, 9)

        def init_w(k, shape, fan_in):
            bound = 1.0 / math.sqrt(fan_in)
            return jax.random.uniform(k, shape, jnp.float32, -bound, bound)

        E = embed_dim
        # torch nn.Linear layout: weight (out, in), bias (out,)
        self.Wq = init_w(ks[0], (E, E), E); self.bq = init_w(ks[1], (E,), E)
        self.Wk = init_w(ks[2], (E, E), E); self.bk = init_w(ks[3], (E,), E)
        self.Wv = init_w(ks[4], (E, E), E); self.bv = init_w(ks[5], (E,), E)
        self.Wo = init_w(ks[6], (E, E), E); self.bo = init_w(ks[7], (E,), E)

        # relative_position_bias_table: ((2w-1)^2, H), trunc_normal(std=0.02)
        wh, ww = self.window_size
        tbl_shape = ((2 * wh - 1) * (2 * ww - 1), num_heads)
        self.rpe_table = (
            jax.random.truncated_normal(ks[8], -2.0, 2.0, tbl_shape, jnp.float32) * 0.02
        )

        # relative_position_index buffer (same construction as the torch code)
        coords_h = np.arange(wh)
        coords_w = np.arange(ww)
        coords = np.stack(np.meshgrid(coords_h, coords_w, indexing="ij"))  # (2,wh,ww)
        coords_flat = coords.reshape(2, -1)                                # (2, L)
        rel = coords_flat[:, :, None] - coords_flat[:, None, :]            # (2, L, L)
        rel = rel.transpose(1, 2, 0).copy()                                # (L, L, 2)
        rel[:, :, 0] += wh - 1
        rel[:, :, 1] += ww - 1
        rel[:, :, 0] *= 2 * ww - 1
        self.rel_pos_index = jnp.asarray(rel.sum(-1), dtype=jnp.int32)     # (L, L)

        # ---- static precompute hoisted out of __call__ (perf review) ----
        L = wh * ww
        bias = self.rpe_table[self.rel_pos_index.reshape(-1)].reshape(L, L, num_heads)
        self.rpe_bias = jnp.transpose(bias, (2, 0, 1))                     # (H, L, L)

        # Fused block-diagonal qkv projection: [x_q | x_k | x_v] @ w_in + b_in
        # (head-dim scaling folded into the q block so it stays in-kernel).
        w_in = jnp.zeros((3 * E, 3 * E), jnp.float32)
        w_in = w_in.at[0:E, 0:E].set(self.Wq.T * scaling)
        w_in = w_in.at[E:2 * E, E:2 * E].set(self.Wk.T)
        w_in = w_in.at[2 * E:, 2 * E:].set(self.Wv.T)
        self.w_in = w_in
        self.b_in = jnp.concatenate(
            [self.bq * scaling, self.bk, self.bv]).reshape(1, 3 * E)
        self.wo_t = self.Wo.T
        self.bo_row = self.bo.reshape(1, E)

    def __call__(self, query, key, value):
        """query/key/value: (L, B, E).  Returns (attn_output, q, k) like the
        torch module with need_weights=False."""
        L, B, E = query.shape
        assert L == self.window_size[0] * self.window_size[1]
        return mha_rpe_forward(query, key, value, self.w_in, self.b_in,
                               self.wo_t, self.bo_row, self.rpe_bias,
                               num_heads=self.num_heads, head_dim=self.head_dim)


# ----------------------------------------------------------------------------
# Pure-JAX reference (correctness sanity check)
# ----------------------------------------------------------------------------
def reference_forward(mod, query, key, value):
    L, B, E = query.shape
    H, Dh = mod.num_heads, mod.head_dim
    scaling = float(Dh) ** -0.5
    q = (query.reshape(L * B, E) @ mod.Wq.T + mod.bq) * scaling
    k = key.reshape(L * B, E) @ mod.Wk.T + mod.bk
    v = value.reshape(L * B, E) @ mod.Wv.T + mod.bv
    q = jnp.transpose(q.reshape(L, B * H, Dh), (1, 0, 2))
    k = jnp.transpose(k.reshape(L, B * H, Dh), (1, 0, 2))
    v = jnp.transpose(v.reshape(L, B * H, Dh), (1, 0, 2))
    s = jnp.einsum("bld,bmd->blm", q, k)
    s = s.reshape(B, H, L, L) + mod.rpe_bias[None]
    s = s.reshape(B * H, L, L)
    p = jax.nn.softmax(s, axis=-1)
    o = jnp.einsum("blm,bmd->bld", p, v)
    o = jnp.transpose(o, (1, 0, 2)).reshape(L, B, E)
    o = o @ mod.Wo.T + mod.bo
    return o, q, k


# ----------------------------------------------------------------------------
# Main
# ----------------------------------------------------------------------------
if __name__ == "__main__":
    embed_dim = 32
    num_heads = 4
    window_size = 7
    L = window_size * window_size   # 49
    B = 2

    mod = MultiheadAttentionRPEPallas(embed_dim, num_heads, window_size, seed=0)

    key = jax.random.PRNGKey(0)
    kq, kk, kv = jax.random.split(key, 3)
    query = jax.random.normal(kq, (L, B, embed_dim), jnp.float32)
    keyt = jax.random.normal(kk, (L, B, embed_dim), jnp.float32)
    value = jax.random.normal(kv, (L, B, embed_dim), jnp.float32)

    out, q_out, k_out = mod(query, keyt, value)
    jax.block_until_ready((out, q_out, k_out))

    # sanity check vs pure-JAX reference
    ref_out, ref_q, ref_k = reference_forward(mod, query, keyt, value)
    np.testing.assert_allclose(np.asarray(q_out), np.asarray(ref_q),
                               rtol=1e-4, atol=1e-4)
    np.testing.assert_allclose(np.asarray(k_out), np.asarray(ref_k),
                               rtol=1e-4, atol=1e-4)
    # attn output uses pl.reciprocal(approx=True) in the softmax -> looser tol
    np.testing.assert_allclose(np.asarray(out), np.asarray(ref_out),
                               rtol=5e-3, atol=5e-3)

    print("KERNEL_OK")
</pallas_src>

<mosaic_0001>
module attributes {stable_mosaic.version = 11 : i64} {
  func.func @_fused_mha_rpe_kernel(%arg0: i32, %arg1: memref<1x49x96xf32, #tpu.memory_space<vmem>>, %arg2: memref<96x96xf32, #tpu.memory_space<vmem>>, %arg3: memref<1x96xf32, #tpu.memory_space<vmem>>, %arg4: memref<32x32xf32, #tpu.memory_space<vmem>>, %arg5: memref<1x32xf32, #tpu.memory_space<vmem>>, %arg6: memref<4x49x49xf32, #tpu.memory_space<vmem>>, %arg7: memref<1x49x32xf32, #tpu.memory_space<vmem>>, %arg8: memref<1x4x49x8xf32, #tpu.memory_space<vmem>>, %arg9: memref<1x4x49x8xf32, #tpu.memory_space<vmem>>) attributes {dimension_semantics = [#tpu.dimension_semantics<parallel>], iteration_bounds = array<i64: 2>, scalar_prefetch = 0 : i64, scratch_operands = 0 : i64, tpu.core_type = #tpu.core_type<tc>, window_params = [{transform_indices = @transform_0, window_bounds = array<i64: 1, 49, 96>}, {pipeline_mode = #tpu.pipeline_mode<synchronous>, transform_indices = @transform_1, window_bounds = array<i64: 96, 96>}, {pipeline_mode = #tpu.pipeline_mode<synchronous>, transform_indices = @transform_2, window_bounds = array<i64: 1, 96>}, {pipeline_mode = #tpu.pipeline_mode<synchronous>, transform_indices = @transform_3, window_bounds = array<i64: 32, 32>}, {pipeline_mode = #tpu.pipeline_mode<synchronous>, transform_indices = @transform_4, window_bounds = array<i64: 1, 32>}, {pipeline_mode = #tpu.pipeline_mode<synchronous>, transform_indices = @transform_5, window_bounds = array<i64: 4, 49, 49>}, {transform_indices = @transform_6, window_bounds = array<i64: 1, 49, 32>}, {transform_indices = @transform_7, window_bounds = array<i64: 1, 4, 49, 8>}, {transform_indices = @transform_8, window_bounds = array<i64: 1, 4, 49, 8>}]} {
    %c0 = arith.constant 0 : index
    %c0_0 = arith.constant 0 : index
    %c0_1 = arith.constant 0 : index
    %0 = vector.load %arg1[%c0, %c0_0, %c0_1] : memref<1x49x96xf32, #tpu.memory_space<vmem>>, vector<1x49x96xf32>
    %1 = vector.shape_cast %0 : vector<1x49x96xf32> to vector<49x96xf32>
    %c0_2 = arith.constant 0 : index
    %c0_3 = arith.constant 0 : index
    %2 = vector.load %arg2[%c0_2, %c0_3] : memref<96x96xf32, #tpu.memory_space<vmem>>, vector<96x96xf32>
    %cst = arith.constant dense<0.000000e+00> : vector<49x96xf32>
    %3 = tpu.matmul %1, %2, %cst {dimension_numbers = #tpu.dot_dimension_numbers<[1], [0], [0], [1], [0, 0, 1, 1], [], []>} : vector<49x96xf32>, vector<96x96xf32>, vector<49x96xf32> -> vector<49x96xf32>
    %c0_4 = arith.constant 0 : index
    %c0_5 = arith.constant 0 : index
    %4 = vector.load %arg3[%c0_4, %c0_5] : memref<1x96xf32, #tpu.memory_space<vmem>>, vector<1x96xf32>
    %5 = vector.broadcast %4 : vector<1x96xf32> to vector<49x96xf32>
    %6 = arith.addf %3, %5 : vector<49x96xf32>
    %7 = vector.extract_strided_slice %6 {offsets = [0, 0], sizes = [49, 8], strides = [1, 1]} : vector<49x96xf32> to vector<49x8xf32>
    %8 = vector.extract_strided_slice %6 {offsets = [0, 32], sizes = [49, 8], strides = [1, 1]} : vector<49x96xf32> to vector<49x8xf32>
    %9 = vector.extract_strided_slice %6 {offsets = [0, 64], sizes = [49, 8], strides = [1, 1]} : vector<49x96xf32> to vector<49x8xf32>
    %c0_6 = arith.constant 0 : index
    %c0_7 = arith.constant 0 : index
    %c0_8 = arith.constant 0 : index
    %c0_9 = arith.constant 0 : index
    %10 = vector.load %arg8[%c0_6, %c0_7, %c0_8, %c0_9] : memref<1x4x49x8xf32, #tpu.memory_space<vmem>>, vector<1x1x49x8xf32>
    %11 = vector.shape_cast %10 : vector<1x1x49x8xf32> to vector<49x8xf32>
    %12 = vector.shape_cast %7 : vector<49x8xf32> to vector<1x1x49x8xf32>
    tpu.vector_store %arg8[%c0_6, %c0_7, %c0_8, %c0_9], %12 {strides = array<i32>} : memref<1x4x49x8xf32, #tpu.memory_space<vmem>>, vector<1x1x49x8xf32>,
    %c0_10 = arith.constant 0 : index
    %c0_11 = arith.constant 0 : index
    %c0_12 = arith.constant 0 : index
    %c0_13 = arith.constant 0 : index
    %13 = vector.load %arg9[%c0_10, %c0_11, %c0_12, %c0_13] : memref<1x4x49x8xf32, #tpu.memory_space<vmem>>, vector<1x1x49x8xf32>
    %14 = vector.shape_cast %13 : vector<1x1x49x8xf32> to vector<49x8xf32>
    %15 = vector.shape_cast %8 : vector<49x8xf32> to vector<1x1x49x8xf32>
    tpu.vector_store %arg9[%c0_10, %c0_11, %c0_12, %c0_13], %15 {strides = array<i32>} : memref<1x4x49x8xf32, #tpu.memory_space<vmem>>, vector<1x1x49x8xf32>,
    %16 = tpu.transpose %8, [1, 0] : vector<49x8xf32> -> vector<8x49xf32>
    %cst_14 = arith.constant dense<0.000000e+00> : vector<49x49xf32>
    %17 = tpu.matmul %7, %16, %cst_14 {dimension_numbers = #tpu.dot_dimension_numbers<[1], [0], [0], [1], [0, 0, 1, 1], [], []>} : vector<49x8xf32>, vector<8x49xf32>, vector<49x49xf32> -> vector<49x49xf32>
    %c0_15 = arith.constant 0 : index
    %c0_16 = arith.constant 0 : index
    %c0_17 = arith.constant 0 : index
    %18 = vector.load %arg6[%c0_15, %c0_16, %c0_17] : memref<4x49x49xf32, #tpu.memory_space<vmem>>, vector<1x49x49xf32>
    %19 = vector.shape_cast %18 : vector<1x49x49xf32> to vector<49x49xf32>
    %20 = arith.addf %17, %19 : vector<49x49xf32>
    %cst_18 = arith.constant dense<0xFF800000> : vector<49xf32>
    %21 = vector.multi_reduction <maximumf>, %20, %cst_18 [1] : vector<49x49xf32> to vector<49xf32>
    %22 = vector.shape_cast %21 : vector<49xf32> to vector<49x1xf32>
    %23 = vector.broadcast %22 : vector<49x1xf32> to vector<49x49xf32>
    %24 = arith.subf %20, %23 : vector<49x49xf32>
    %25 = math.exp %24 : vector<49x49xf32>
    %cst_19 = arith.constant dense<0.000000e+00> : vector<49xf32>
    %26 = vector.multi_reduction <add>, %25, %cst_19 [1] : vector<49x49xf32> to vector<49xf32>
    %27 = vector.shape_cast %26 : vector<49xf32> to vector<49x1xf32>
    %28 = tpu.reciprocal %27 {approx = true} : vector<49x1xf32> -> vector<49x1xf32>
    %29 = vector.broadcast %28 : vector<49x1xf32> to vector<49x49xf32>
    %30 = arith.mulf %25, %29 : vector<49x49xf32>
    %cst_20 = arith.constant dense<0.000000e+00> : vector<49x8xf32>
    %31 = tpu.matmul %30, %9, %cst_20 {dimension_numbers = #tpu.dot_dimension_numbers<[1], [0], [0], [1], [0, 0, 1, 1], [], []>} : vector<49x49xf32>, vector<49x8xf32>, vector<49x8xf32> -> vector<49x8xf32>
    %32 = vector.extract_strided_slice %6 {offsets = [0, 8], sizes = [49, 8], strides = [1, 1]} : vector<49x96xf32> to vector<49x8xf32>
    %33 = vector.extract_strided_slice %6 {offsets = [0, 40], sizes = [49, 8], strides = [1, 1]} : vector<49x96xf32> to vector<49x8xf32>
    %34 = vector.extract_strided_slice %6 {offsets = [0, 72], sizes = [49, 8], strides = [1, 1]} : vector<49x96xf32> to vector<49x8xf32>
    %c0_21 = arith.constant 0 : index
    %c1 = arith.constant 1 : index
    %c0_22 = arith.constant 0 : index
    %c0_23 = arith.constant 0 : index
    %35 = vector.load %arg8[%c0_21, %c1, %c0_22, %c0_23] : memref<1x4x49x8xf32, #tpu.memory_space<vmem>>, vector<1x1x49x8xf32>
    %36 = vector.shape_cast %35 : vector<1x1x49x8xf32> to vector<49x8xf32>
    %37 = vector.shape_cast %32 : vector<49x8xf32> to vector<1x1x49x8xf32>
    tpu.vector_store %arg8[%c0_21, %c1, %c0_22, %c0_23], %37 {strides = array<i32>} : memref<1x4x49x8xf32, #tpu.memory_space<vmem>>, vector<1x1x49x8xf32>,
    %c0_24 = arith.constant 0 : index
    %c1_25 = arith.constant 1 : index
    %c0_26 = arith.constant 0 : index
    %c0_27 = arith.constant 0 : index
    %38 = vector.load %arg9[%c0_24, %c1_25, %c0_26, %c0_27] : memref<1x4x49x8xf32, #tpu.memory_space<vmem>>, vector<1x1x49x8xf32>
    %39 = vector.shape_cast %38 : vector<1x1x49x8xf32> to vector<49x8xf32>
    %40 = vector.shape_cast %33 : vector<49x8xf32> to vector<1x1x49x8xf32>
    tpu.vector_store %arg9[%c0_24, %c1_25, %c0_26, %c0_27], %40 {strides = array<i32>} : memref<1x4x49x8xf32, #tpu.memory_space<vmem>>, vector<1x1x49x8xf32>,
    %41 = tpu.transpose %33, [1, 0] : vector<49x8xf32> -> vector<8x49xf32>
    %cst_28 = arith.constant dense<0.000000e+00> : vector<49x49xf32>
    %42 = tpu.matmul %32, %41, %cst_28 {dimension_numbers = #tpu.dot_dimension_numbers<[1], [0], [0], [1], [0, 0, 1, 1], [], []>} : vector<49x8xf32>, vector<8x49xf32>, vector<49x49xf32> -> vector<49x49xf32>
    %c1_29 = arith.constant 1 : index
    %c0_30 = arith.constant 0 : index
    %c0_31 = arith.constant 0 : index
    %43 = vector.load %arg6[%c1_29, %c0_30, %c0_31] : memref<4x49x49xf32, #tpu.memory_space<vmem>>, vector<1x49x49xf32>
    %44 = vector.shape_cast %43 : vector<1x49x49xf32> to vector<49x49xf32>
    %45 = arith.addf %42, %44 : vector<49x49xf32>
    %cst_32 = arith.constant dense<0xFF800000> : vector<49xf32>
    %46 = vector.multi_reduction <maximumf>, %45, %cst_32 [1] : vector<49x49xf32> to vector<49xf32>
    %47 = vector.shape_cast %46 : vector<49xf32> to vector<49x1xf32>
    %48 = vector.broadcast %47 : vector<49x1xf32> to vector<49x49xf32>
    %49 = arith.subf %45, %48 : vector<49x49xf32>
    %50 = math.exp %49 : vector<49x49xf32>
    %cst_33 = arith.constant dense<0.000000e+00> : vector<49xf32>
    %51 = vector.multi_reduction <add>, %50, %cst_33 [1] : vector<49x49xf32> to vector<49xf32>
    %52 = vector.shape_cast %51 : vector<49xf32> to vector<49x1xf32>
    %53 = tpu.reciprocal %52 {approx = true} : vector<49x1xf32> -> vector<49x1xf32>
    %54 = vector.broadcast %53 : vector<49x1xf32> to vector<49x49xf32>
    %55 = arith.mulf %50, %54 : vector<49x49xf32>
    %cst_34 = arith.constant dense<0.000000e+00> : vector<49x8xf32>
    %56 = tpu.matmul %55, %34, %cst_34 {dimension_numbers = #tpu.dot_dimension_numbers<[1], [0], [0], [1], [0, 0, 1, 1], [], []>} : vector<49x49xf32>, vector<49x8xf32>, vector<49x8xf32> -> vector<49x8xf32>
    %57 = vector.extract_strided_slice %6 {offsets = [0, 16], sizes = [49, 8], strides = [1, 1]} : vector<49x96xf32> to vector<49x8xf32>
    %58 = vector.extract_strided_slice %6 {offsets = [0, 48], sizes = [49, 8], strides = [1, 1]} : vector<49x96xf32> to vector<49x8xf32>
    %59 = vector.extract_strided_slice %6 {offsets = [0, 80], sizes = [49, 8], strides = [1, 1]} : vector<49x96xf32> to vector<49x8xf32>
    %c0_35 = arith.constant 0 : index
    %c2 = arith.constant 2 : index
    %c0_36 = arith.constant 0 : index
    %c0_37 = arith.constant 0 : index
    %60 = vector.load %arg8[%c0_35, %c2, %c0_36, %c0_37] : memref<1x4x49x8xf32, #tpu.memory_space<vmem>>, vector<1x1x49x8xf32>
    %61 = vector.shape_cast %60 : vector<1x1x49x8xf32> to vector<49x8xf32>
    %62 = vector.shape_cast %57 : vector<49x8xf32> to vector<1x1x49x8xf32>
    tpu.vector_store %arg8[%c0_35, %c2, %c0_36, %c0_37], %62 {strides = array<i32>} : memref<1x4x49x8xf32, #tpu.memory_space<vmem>>, vector<1x1x49x8xf32>,
    %c0_38 = arith.constant 0 : index
    %c2_39 = arith.constant 2 : index
    %c0_40 = arith.constant 0 : index
    %c0_41 = arith.constant 0 : index
    %63 = vector.load %arg9[%c0_38, %c2_39, %c0_40, %c0_41] : memref<1x4x49x8xf32, #tpu.memory_space<vmem>>, vector<1x1x49x8xf32>
    %64 = vector.shape_cast %63 : vector<1x1x49x8xf32> to vector<49x8xf32>
    %65 = vector.shape_cast %58 : vector<49x8xf32> to vector<1x1x49x8xf32>
    tpu.vector_store %arg9[%c0_38, %c2_39, %c0_40, %c0_41], %65 {strides = array<i32>} : memref<1x4x49x8xf32, #tpu.memory_space<vmem>>, vector<1x1x49x8xf32>,
    %66 = tpu.transpose %58, [1, 0] : vector<49x8xf32> -> vector<8x49xf32>
    %cst_42 = arith.constant dense<0.000000e+00> : vector<49x49xf32>
    %67 = tpu.matmul %57, %66, %cst_42 {dimension_numbers = #tpu.dot_dimension_numbers<[1], [0], [0], [1], [0, 0, 1, 1], [], []>} : vector<49x8xf32>, vector<8x49xf32>, vector<49x49xf32> -> vector<49x49xf32>
    %c2_43 = arith.constant 2 : index
    %c0_44 = arith.constant 0 : index
    %c0_45 = arith.constant 0 : index
    %68 = vector.load %arg6[%c2_43, %c0_44, %c0_45] : memref<4x49x49xf32, #tpu.memory_space<vmem>>, vector<1x49x49xf32>
    %69 = vector.shape_cast %68 : vector<1x49x49xf32> to vector<49x49xf32>
    %70 = arith.addf %67, %69 : vector<49x49xf32>
    %cst_46 = arith.constant dense<0xFF800000> : vector<49xf32>
    %71 = vector.multi_reduction <maximumf>, %70, %cst_46 [1] : vector<49x49xf32> to vector<49xf32>
    %72 = vector.shape_cast %71 : vector<49xf32> to vector<49x1xf32>
    %73 = vector.broadcast %72 : vector<49x1xf32> to vector<49x49xf32>
    %74 = arith.subf %70, %73 : vector<49x49xf32>
    %75 = math.exp %74 : vector<49x49xf32>
    %cst_47 = arith.constant dense<0.000000e+00> : vector<49xf32>
    %76 = vector.multi_reduction <add>, %75, %cst_47 [1] : vector<49x49xf32> to vector<49xf32>
    %77 = vector.shape_cast %76 : vector<49xf32> to vector<49x1xf32>
    %78 = tpu.reciprocal %77 {approx = true} : vector<49x1xf32> -> vector<49x1xf32>
    %79 = vector.broadcast %78 : vector<49x1xf32> to vector<49x49xf32>
    %80 = arith.mulf %75, %79 : vector<49x49xf32>
    %cst_48 = arith.constant dense<0.000000e+00> : vector<49x8xf32>
    %81 = tpu.matmul %80, %59, %cst_48 {dimension_numbers = #tpu.dot_dimension_numbers<[1], [0], [0], [1], [0, 0, 1, 1], [], []>} : vector<49x49xf32>, vector<49x8xf32>, vector<49x8xf32> -> vector<49x8xf32>
    %82 = vector.extract_strided_slice %6 {offsets = [0, 24], sizes = [49, 8], strides = [1, 1]} : vector<49x96xf32> to vector<49x8xf32>
    %83 = vector.extract_strided_slice %6 {offsets = [0, 56], sizes = [49, 8], strides = [1, 1]} : vector<49x96xf32> to vector<49x8xf32>
    %84 = vector.extract_strided_slice %6 {offsets = [0, 88], sizes = [49, 8], strides = [1, 1]} : vector<49x96xf32> to vector<49x8xf32>
    %c0_49 = arith.constant 0 : index
    %c3 = arith.constant 3 : index
    %c0_50 = arith.constant 0 : index
    %c0_51 = arith.constant 0 : index
    %85 = vector.load %arg8[%c0_49, %c3, %c0_50, %c0_51] : memref<1x4x49x8xf32, #tpu.memory_space<vmem>>, vector<1x1x49x8xf32>
    %86 = vector.shape_cast %85 : vector<1x1x49x8xf32> to vector<49x8xf32>
    %87 = vector.shape_cast %82 : vector<49x8xf32> to vector<1x1x49x8xf32>
    tpu.vector_store %arg8[%c0_49, %c3, %c0_50, %c0_51], %87 {strides = array<i32>} : memref<1x4x49x8xf32, #tpu.memory_space<vmem>>, vector<1x1x49x8xf32>,
    %c0_52 = arith.constant 0 : index
    %c3_53 = arith.constant 3 : index
    %c0_54 = arith.constant 0 : index
    %c0_55 = arith.constant 0 : index
    %88 = vector.load %arg9[%c0_52, %c3_53, %c0_54, %c0_55] : memref<1x4x49x8xf32, #tpu.memory_space<vmem>>, vector<1x1x49x8xf32>
    %89 = vector.shape_cast %88 : vector<1x1x49x8xf32> to vector<49x8xf32>
    %90 = vector.shape_cast %83 : vector<49x8xf32> to vector<1x1x49x8xf32>
    tpu.vector_store %arg9[%c0_52, %c3_53, %c0_54, %c0_55], %90 {strides = array<i32>} : memref<1x4x49x8xf32, #tpu.memory_space<vmem>>, vector<1x1x49x8xf32>,
    %91 = tpu.transpose %83, [1, 0] : vector<49x8xf32> -> vector<8x49xf32>
    %cst_56 = arith.constant dense<0.000000e+00> : vector<49x49xf32>
    %92 = tpu.matmul %82, %91, %cst_56 {dimension_numbers = #tpu.dot_dimension_numbers<[1], [0], [0], [1], [0, 0, 1, 1], [], []>} : vector<49x8xf32>, vector<8x49xf32>, vector<49x49xf32> -> vector<49x49xf32>
    %c3_57 = arith.constant 3 : index
    %c0_58 = arith.constant 0 : index
    %c0_59 = arith.constant 0 : index
    %93 = vector.load %arg6[%c3_57, %c0_58, %c0_59] : memref<4x49x49xf32, #tpu.memory_space<vmem>>, vector<1x49x49xf32>
    %94 = vector.shape_cast %93 : vector<1x49x49xf32> to vector<49x49xf32>
    %95 = arith.addf %92, %94 : vector<49x49xf32>
    %cst_60 = arith.constant dense<0xFF800000> : vector<49xf32>
    %96 = vector.multi_reduction <maximumf>, %95, %cst_60 [1] : vector<49x49xf32> to vector<49xf32>
    %97 = vector.shape_cast %96 : vector<49xf32> to vector<49x1xf32>
    %98 = vector.broadcast %97 : vector<49x1xf32> to vector<49x49xf32>
    %99 = arith.subf %95, %98 : vector<49x49xf32>
    %100 = math.exp %99 : vector<49x49xf32>
    %cst_61 = arith.constant dense<0.000000e+00> : vector<49xf32>
    %101 = vector.multi_reduction <add>, %100, %cst_61 [1] : vector<49x49xf32> to vector<49xf32>
    %102 = vector.shape_cast %101 : vector<49xf32> to vector<49x1xf32>
    %103 = tpu.reciprocal %102 {approx = true} : vector<49x1xf32> -> vector<49x1xf32>
    %104 = vector.broadcast %103 : vector<49x1xf32> to vector<49x49xf32>
    %105 = arith.mulf %100, %104 : vector<49x49xf32>
    %cst_62 = arith.constant dense<0.000000e+00> : vector<49x8xf32>
    %106 = tpu.matmul %105, %84, %cst_62 {dimension_numbers = #tpu.dot_dimension_numbers<[1], [0], [0], [1], [0, 0, 1, 1], [], []>} : vector<49x49xf32>, vector<49x8xf32>, vector<49x8xf32> -> vector<49x8xf32>
    %107 = tpu.concatenate %31, %56, %81, %106 in 1 : vector<49x8xf32>, vector<49x8xf32>, vector<49x8xf32>, vector<49x8xf32> -> vector<49x32xf32>
    %c0_63 = arith.constant 0 : index
    %c0_64 = arith.constant 0 : index
    %108 = vector.load %arg4[%c0_63, %c0_64] : memref<32x32xf32, #tpu.memory_space<vmem>>, vector<32x32xf32>
    %cst_65 = arith.constant dense<0.000000e+00> : vector<49x32xf32>
    %109 = tpu.matmul %107, %108, %cst_65 {dimension_numbers = #tpu.dot_dimension_numbers<[1], [0], [0], [1], [0, 0, 1, 1], [], []>} : vector<49x32xf32>, vector<32x32xf32>, vector<49x32xf32> -> vector<49x32xf32>
    %c0_66 = arith.constant 0 : index
    %c0_67 = arith.constant 0 : index
    %110 = vector.load %arg5[%c0_66, %c0_67] : memref<1x32xf32, #tpu.memory_space<vmem>>, vector<1x32xf32>
    %111 = vector.broadcast %110 : vector<1x32xf32> to vector<49x32xf32>
    %112 = arith.addf %109, %111 : vector<49x32xf32>
    %c0_68 = arith.constant 0 : index
    %c0_69 = arith.constant 0 : index
    %c0_70 = arith.constant 0 : index
    %113 = vector.load %arg7[%c0_68, %c0_69, %c0_70] : memref<1x49x32xf32, #tpu.memory_space<vmem>>, vector<1x49x32xf32>
    %114 = vector.shape_cast %113 : vector<1x49x32xf32> to vector<49x32xf32>
    %115 = vector.shape_cast %112 : vector<49x32xf32> to vector<1x49x32xf32>
    tpu.vector_store %arg7[%c0_68, %c0_69, %c0_70], %115 {strides = array<i32>} : memref<1x49x32xf32, #tpu.memory_space<vmem>>, vector<1x49x32xf32>,
    return
  }
  func.func @transform_0(%arg0: i32) -> (i32, i32, i32) {
    %c0_i32 = arith.constant 0 : i32
    %c0_i32_0 = arith.constant 0 : i32
    %c0_i32_1 = arith.constant 0 : i32
    return %arg0, %c0_i32, %c0_i32_0 : i32, i32, i32
  }
  func.func @transform_1(%arg0: i32) -> (i32, i32) {
    %c0_i32 = arith.constant 0 : i32
    %c0_i32_0 = arith.constant 0 : i32
    %c0_i32_1 = arith.constant 0 : i32
    return %c0_i32, %c0_i32_0 : i32, i32
  }
  func.func @transform_2(%arg0: i32) -> (i32, i32) {
    %c0_i32 = arith.constant 0 : i32
    %c0_i32_0 = arith.constant 0 : i32
    %c0_i32_1 = arith.constant 0 : i32
    return %c0_i32, %c0_i32_0 : i32, i32
  }
  func.func @transform_3(%arg0: i32) -> (i32, i32) {
    %c0_i32 = arith.constant 0 : i32
    %c0_i32_0 = arith.constant 0 : i32
    %c0_i32_1 = arith.constant 0 : i32
    return %c0_i32, %c0_i32_0 : i32, i32
  }
  func.func @transform_4(%arg0: i32) -> (i32, i32) {
    %c0_i32 = arith.constant 0 : i32
    %c0_i32_0 = arith.constant 0 : i32
    %c0_i32_1 = arith.constant 0 : i32
    return %c0_i32, %c0_i32_0 : i32, i32
  }
  func.func @transform_5(%arg0: i32) -> (i32, i32, i32) {
    %c0_i32 = arith.constant 0 : i32
    %c0_i32_0 = arith.constant 0 : i32
    %c0_i32_1 = arith.constant 0 : i32
    %c0_i32_2 = arith.constant 0 : i32
    return %c0_i32, %c0_i32_0, %c0_i32_1 : i32, i32, i32
  }
  func.func @transform_6(%arg0: i32) -> (i32, i32, i32) {
    %c0_i32 = arith.constant 0 : i32
    %c0_i32_0 = arith.constant 0 : i32
    %c0_i32_1 = arith.constant 0 : i32
    return %arg0, %c0_i32, %c0_i32_0 : i32, i32, i32
  }
  func.func @transform_7(%arg0: i32) -> (i32, i32, i32, i32) {
    %c0_i32 = arith.constant 0 : i32
    %c0_i32_0 = arith.constant 0 : i32
    %c0_i32_1 = arith.constant 0 : i32
    %c0_i32_2 = arith.constant 0 : i32
    return %arg0, %c0_i32, %c0_i32_0, %c0_i32_1 : i32, i32, i32, i32
  }
  func.func @transform_8(%arg0: i32) -> (i32, i32, i32, i32) {
    %c0_i32 = arith.constant 0 : i32
    %c0_i32_0 = arith.constant 0 : i32
    %c0_i32_1 = arith.constant 0 : i32
    %c0_i32_2 = arith.constant 0 : i32
    return %arg0, %c0_i32, %c0_i32_0, %c0_i32_1 : i32, i32, i32, i32
  }
}

</mosaic_0001>

<bundles_post_ra>
// kernel: mha_rpe_forward.1
= control target key start
LH: loop header
LB: loop body
LE: loop exit
PB: predicated region body
PF: predicated region fallthrough
CT: control target
= control target key end

     0   :  { %s2330_s27 = smov 0   ;;  %s3326_s0 = inlined_call_operand.vmem [shape: f32[2,49,96], index: 0, kind: input, shape index: {}]   ;;  %s3327_s1 = inlined_call_operand.vmem [shape: f32[96,96], index: 1, kind: input, shape index: {}]   ;;  %s3328_s2 = inlined_call_operand.vmem [shape: f32[1,96], index: 2, kind: input, shape index: {}]   ;;  %s3329_s3 = inlined_call_operand.vmem [shape: f32[32,32], index: 3, kind: input, shape index: {}]   ;;  %s3330_s4 = inlined_call_operand.vmem [shape: f32[1,32], index: 4, kind: input, shape index: {}]   ;;  %s3331_s5 = inlined_call_operand.vmem [shape: f32[4,49,49], index: 5, kind: input, shape index: {}]   ;;  %s3332_s6 = inlined_call_operand.vmem [shape: f32[2,49,32], index: 6, kind: output, shape index: {0}]   ;;  %s3333_s7 = inlined_call_operand.vmem [shape: f32[2,4,49,8], index: 7, kind: output, shape index: {1}]   ;;  %s3334_s8 = inlined_call_operand.vmem [shape: f32[2,4,49,8], index: 8, kind: output, shape index: {2}]  }
   0x1 LB: > { %s1866_s28 = sadd.s32 4294967295, %s2269_s27   ;;  %p1870_p0 = scmp.ge.s32.totalorder %s2269_s27, 1  ;;  %s2269_s27 = sphi %s2330_s27, %s19_s27  }
   0x2   : > { %p267_p1 = scmp.lt.s32.totalorder %s2269_s27, 3 }
   0x4   : > { %p268_p2 = pnand %p1870_p0, %p267_p1 }
   0x5   : > { %p311_p3 = scmp.lt.s32.totalorder (!%p268_p2), %s1866_s28, 1  ;;  %s2271_s21 = smov (!%p268_p2), 96  }
   0x6   : > { %271 = sbr.rel (%p268_p2) target bundleno = 1829 (0x725), region = 44  ;;  %s2272_s22 = smov (!%p268_p2), 64  }
   0x7   : > { %s2273_s23 = smov (!%p268_p2), 88   ;;  %s2274_s24 = smov (!%p268_p2), 120  }
   0x8   : > { %s2275_s26 = smov (!%p268_p2), 72   ;;  %s2276_s29 = smov (!%p268_p2), 80  }
   0x9   : > { %s2277_s30 = smov (!%p268_p2), 104   ;;  %s2284_s17 = smov (!%p268_p2), 24  }
   0xb   : > { %v349_v0 = vld [vmem:[%s3327_s1 + $0x58] sm:$0xff]  ;;  %v348_v1 = vld [vmem:[%s3327_s1 + $0x50] sm:$0xff]  ;;  %v347_v2 = vld [vmem:[%s3327_s1 + $0x48] sm:$0xff]  ;;  %s3336_s28 = smov (!%p311_p3, %s1866_s28), 1  ;;  %vm354_vm0 = vcmask 785408   ;;  %vm414_vm1 = vcmask 64512  }
   0xc   : > { %380 = vmatpush.msra.mxu0 %v349_v0  ;;  %2042 = vmatpush.msra.mxu1 %v349_v0  ;;  %v346_v3 = vld [vmem:[%s3327_s1 + $0x40] sm:$0xff]  ;;  %v345_v4 = vld [vmem:[%s3327_s1 + $0x38] sm:$0xff]  ;;  %v344_v5 = vld [vmem:[%s3327_s1 + $0x30] sm:$0xff]  ;;  %s2065_s25 = smul.u32 56, %s3336_s28  ;;  %vm421_vm2 = vcmask 57344   ;;  %vm651_vm3 = vcmask 1040384  }
   0xd   : > { %v343_v6 = vld [vmem:[%s3327_s1 + $0x28] sm:$0xff]  ;;  %v342_v7 = vld [vmem:[%s3327_s1 + $0x20] sm:$0xff]  ;;  %v341_v8 = vld [vmem:[%s3327_s1 + $0x18] sm:$0xff]  ;;  %s2066_s15 = smul.u32 224, %s3336_s28  ;;  %vm531_vm4 = vcmask 400384   ;;  %vm550_vm5 = vcmask 393216  }
   0xe   : > { %381 = vmatpush.msra.mxu0 %v348_v1  ;;  %2043 = vmatpush.msra.mxu1 %v348_v1  ;;  %v340_v9 = vld [vmem:[%s3327_s1 + $0x10] sm:$0xff]  ;;  %v339_v10 = vld [vmem:[%s3327_s1 + $0x8] sm:$0xff]  ;;  %s315_s12 = scalar_lea.vmem %s3326_s0, %s2065_s25  ;;  %v338_v11 = vld [vmem:[%s3327_s1] sm:$0xff]  ;;  %vm1653_vm6 = vcmask 130048   ;;  %vm1677_vm7 = vcmask 261120   ;;  %vm1661_vm8 = vcmask 195584   ;;  %s320_s13 = scalar_lea.vmem %s3332_s6, %s2065_s25 }
   0xf   : > { %v331_v12 = vld [vmem:[%s315_s12] sm:$0xff]  ;;  %v332_v14 = vld [vmem:[%s315_s12 + $0x8] sm:$0xff]  ;;  %v333_v16 = vld [vmem:[%s315_s12 + $0x10] sm:$0xff]  ;;  %s2391_s20 = scalar_lea.vmem %s3333_s7, %s2066_s15  ;;  %s2500_s11 = scalar_lea.vmem %s3334_s8, %s2066_s15  ;;  %vm1743_vm9 = vcmask 253952  }
  0x10   : > { %382 = vmatpush.msra.mxu0 %v347_v2  ;;  %2044 = vmatpush.msra.mxu1 %v347_v2  ;;  %v335_v13 = vld [vmem:[%s315_s12 + $0x20] sm:$0xff]  ;;  %v336_v15 = vld [vmem:[%s315_s12 + $0x28] sm:$0xff]  ;;  %v337_v17 = vld [vmem:[%s315_s12 + $0x30] sm:$0x1] }
  0x11   : > { %v334_v18 = vld [vmem:[%s315_s12 + $0x18] sm:$0xff]  ;;  %v2149_v19 = vld [vmem:[%s3328_s2] ss:$0 sm:$0xff]  ;;  %s2278_s12 = smov 112  }
  0x12   : > { %383 = vmatpush.msra.mxu0 %v346_v3  ;;  %2045 = vmatpush.msra.mxu1 %v346_v3 }
  0x14   : > { %384 = vmatpush.msra.mxu0 %v345_v4  ;;  %2046 = vmatpush.msra.mxu1 %v345_v4 }
  0x16   : > { %385 = vmatpush.msra.mxu0 %v344_v5  ;;  %2047 = vmatpush.msra.mxu1 %v344_v5 }
  0x18   : > { %386 = vmatpush.msra.mxu0 %v343_v6  ;;  %2048 = vmatpush.msra.mxu1 %v343_v6 }
  0x1a   : > { %387 = vmatpush.msra.mxu0 %v342_v7  ;;  %2049 = vmatpush.msra.mxu1 %v342_v7 }
  0x1c   : > { %388 = vmatpush.msra.mxu0 %v341_v8  ;;  %2050 = vmatpush.msra.mxu1 %v341_v8 }
  0x1e   : > { %389 = vmatpush.msra.mxu0 %v340_v9  ;;  %2051 = vmatpush.msra.mxu1 %v340_v9 }
  0x20   : > { %390 = vmatpush.msra.mxu0 %v339_v10  ;;  %2052 = vmatpush.msra.mxu1 %v339_v10 }
  0x22   : > { %391 = vmatpush.msra.mxu0 %v338_v11  ;;  %2053 = vmatpush.msra.mxu1 %v338_v11 }
  0x23   : > { %1875 = vmatmul.msk.f32.vlgmr.msra.gmra.mxu0 %vm354_vm0, %v331_v12  ;;  %1879 = vmatmul.msk.f32.vlgmr.msra.gmra.mxu1 %vm354_vm0, %v335_v13 }
  0x2b   : > { %1876 = vmatmul.msk.f32.gmra.mxu0 %vm354_vm0, %v332_v14  ;;  %1880 = vmatmul.msk.f32.gmra.mxu1 %vm354_vm0, %v336_v15 }
  0x33   : > { %1877 = vmatmul.msk.f32.gmra.mxu0 %vm354_vm0, %v333_v16  ;;  %1881 = vmatmul.msk.f32.gmra.mxu1 %vm354_vm0, %v337_v17 }
  0x3b   : > { %1878 = vmatmul.msk.f32.gmra.mxu0 %vm354_vm0, %v334_v18 }
  0xa0   : > { %v393_v20 = vpop.f32.mrf.mxu0  ;;  %v405_v21 = vpop.f32.mrf.mxu1 }
  0xa1   : > { %v2393_v22 = vadd.f32 %v2149_v19, %v393_v20  ;;  %v2395_v23 = vadd.f32 %v2149_v19, %v405_v21 }
  0xa3   : > { %415 = vst.msk [vmem:[%s2391_s20] sm:$0xff] %vm414_vm1, %v2393_v22  ;;  %438 = vrot.lane.b32.xlu1 %v2395_v23, %s2271_s21 }
  0xa4   : > { %419 = vst.msk [vmem:[%s2391_s20 + $0x20] sm:$0xff] %vm414_vm1, %v2395_v23 }
  0xa8   : > { %v396_v24 = vpop.f32.mrf.mxu0  ;;  %v408_v25 = vpop.f32.mrf.mxu1 }
  0xa9   : > { %v2404_v26 = vadd.f32 %v2149_v19, %v396_v24  ;;  %v2406_v27 = vadd.f32 %v2149_v19, %v408_v25 }
  0xab   : > { %416 = vst.msk [vmem:[%s2391_s20 + $0x8] sm:$0xff] %vm414_vm1, %v2404_v26  ;;  %v2436_v34 = vpack.i.bf16 %v2395_v23, %v2406_v27  ;;  %v2445_v35 = vpack.i.bf16 %v2393_v22, %v2404_v26 }
  0xac   : > { %420 = vst.msk [vmem:[%s2391_s20 + $0x28] sm:$0xff] %vm414_vm1, %v2406_v27 }
  0xb0   : > { %v399_v28 = vpop.f32.mrf.mxu0  ;;  %v411_v29 = vpop.f32.mrf.mxu1 }
  0xb1   : > { %v2414_v30 = vadd.f32 %v2149_v19, %v399_v28  ;;  %v2416_v31 = vadd.f32 %v2149_v19, %v411_v29 }
  0xb3   : > { %417 = vst.msk [vmem:[%s2391_s20 + $0x10] sm:$0xff] %vm414_vm1, %v2414_v30  ;;  %442 = vrot.lane.b32.xlu0 %v2416_v31, %s2271_s21  ;;  %434 = vrot.lane.b32.xlu2 %v2414_v30, %s2271_s21 }
  0xb4   : > { %422 = vst.msk [vmem:[%s2391_s20 + $0x30] sm:$0x1] %vm421_vm2, %v2416_v31 }
  0xb8   : > { %v402_v32 = vpop.f32.mrf.mxu0 }
  0xb9   : > { %v2426_v33 = vadd.f32 %v2149_v19, %v402_v32  ;;  %v461_v32 = vld [vmem:[%s3331_s5 + $0x18] sm:$0xff] }
  0xbb   : > { %418 = vst.msk [vmem:[%s2391_s20 + $0x18] sm:$0xff] %vm414_vm1, %v2426_v33  ;;  %440 = vrot.lane.b32.xlu0 %v2406_v27, %s2271_s21  ;;  %436 = vrot.lane.b32.xlu1 %v2426_v33, %s2271_s21  ;;  %v2542_v42 = vpack.i.bf16 %v2414_v30, %v2426_v33 }
  0xbc   : > { %432 = vrot.lane.b32.xlu2 %v2404_v26, %s2271_s21 }
  0xc3   : > { %622 = vrot.lane.b32.xlu1 %v2416_v31, %s2272_s22  ;;  %430 = vrot.lane.b32.xlu0 %v2393_v22, %s2271_s21 }
  0xc4   : > { %2090 = vrot.lane.b32.xlu2 %v2436_v34, %s2272_s22 }
  0xcb   : > { %2095 = vrot.lane.b32.xlu1 %v2445_v35, %s2272_s22  ;;  %725 = vrot.lane.b32.xlu0 %v2414_v30, %s2273_s23 }
  0xcc   : > { %723 = vrot.lane.b32.xlu2 %v2404_v26, %s2273_s23 }
  0xd3   : > { %733 = vrot.lane.b32.xlu1 %v2416_v31, %s2273_s23  ;;  %721 = vrot.lane.b32.xlu0 %v2393_v22, %s2273_s23 }
  0xd4   : > { %694 = vrot.lane.b32.xlu2 %v2404_v26, %s2274_s24 }
  0xdb   : > { %731 = vrot.lane.b32.xlu1 %v2406_v27, %s2273_s23  ;;  %696 = vrot.lane.b32.xlu0 %v2414_v30, %s2274_s24 }
  0xdc   : > { %700 = vrot.lane.b32.xlu2 %v2395_v23, %s2274_s24 }
  0xe3   : > { %729 = vrot.lane.b32.xlu1 %v2395_v23, %s2273_s23  ;;  %1313 = vrot.lane.b32.xlu0 %v2416_v31, %s2275_s26 }
  0xe4   : > { %702 = vrot.lane.b32.xlu2 %v2406_v27, %s2274_s24 }
  0xeb   : > { %692 = vrot.lane.b32.xlu1 %v2393_v22, %s2274_s24  ;;  %1311 = vrot.lane.b32.xlu0 %v2406_v27, %s2275_s26 }
  0xec   : > { %1021 = vrot.lane.b32.xlu2 %v2406_v27, %s2276_s29 }
  0xf3   : > { %1309 = vrot.lane.b32.xlu1 %v2395_v23, %s2275_s26  ;;  %1023 = vrot.lane.b32.xlu0 %v2416_v31, %s2276_s29 }
  0xf4   : > { %1019 = vrot.lane.b32.xlu2 %v2395_v23, %s2276_s29 }
  0xfb   : > { %704 = vrot.lane.b32.xlu1 %v2416_v31, %s2274_s24  ;;  %1305 = vrot.lane.b32.xlu0 %v2414_v30, %s2275_s26 }
  0xfc   : > { %1301 = vrot.lane.b32.xlu2 %v2393_v22, %s2275_s26 }
 0x103   : > { %1272 = vrot.lane.b32.xlu1 %v2393_v22, %s2277_s30  ;;  %1303 = vrot.lane.b32.xlu0 %v2404_v26, %s2275_s26 }
 0x104   : > { %1013 = vrot.lane.b32.xlu2 %v2404_v26, %s2276_s29 }
 0x10b   : > { %1274 = vrot.lane.b32.xlu1 %v2404_v26, %s2277_s30  ;;  %1015 = vrot.lane.b32.xlu0 %v2414_v30, %s2276_s29 }
 0x10c   : > { %982 = vrot.lane.b32.xlu2 %v2393_v22, %s2278_s12 }
 0x10d   : > { %v435_v36 = vpop.permute.xlu2 %434 }
 0x10e   : > { %453 = vst.msk [vmem:[%s2500_s11 + $0x10] sm:$0xff] %vm414_vm1, %v435_v36 }
 0x113   : > { %984 = vrot.lane.b32.xlu1 %v2404_v26, %s2278_s12  ;;  %1011 = vrot.lane.b32.xlu0 %v2393_v22, %s2276_s29 }
 0x114   : > { %727 = vrot.lane.b32.xlu2 %v2426_v33, %s2273_s23 }
 0x115   : > { %v439_v37 = vpop.permute.xlu1 %438 }
 0x116   : > { %455 = vst.msk [vmem:[%s2500_s11 + $0x20] sm:$0xff] %vm414_vm1, %v439_v37  ;;  %v433_v38 = vpop.permute.xlu2 %432 }
 0x117   : > { %452 = vst.msk [vmem:[%s2500_s11 + $0x8] sm:$0xff] %vm414_vm1, %v433_v38 }
 0x11b   : > { %1280 = vrot.lane.b32.xlu1 %v2395_v23, %s2277_s30  ;;  %1276 = vrot.lane.b32.xlu0 %v2414_v30, %s2277_s30 }
 0x11c   : > { %698 = vrot.lane.b32.xlu2 %v2426_v33, %s2274_s24  ;;  %s2280_s24 = smov 40  }
 0x11e   : > { %v2091_v39 = vpop.permute.xlu2 %2090 }
 0x11f   : > { %v2092_v49 = vunpack.i.l.bf16 %v2091_v39  ;;  %v2093_v50 = vunpack.i.h.bf16 %v2091_v39  ;;  %v462_v39 = vld [vmem:[%s3331_s5 + $0x20] sm:$0xff] }
 0x123   : > { %1307 = vrot.lane.b32.xlu1 %v2426_v33, %s2275_s26  ;;  %986 = vrot.lane.b32.xlu0 %v2414_v30, %s2278_s12  ;;  %s2281_s26 = smov 48  }
 0x124   : > { %1278 = vrot.lane.b32.xlu2 %v2426_v33, %s2277_s30 }
 0x125   : > { %v443_v40 = vpop.permute.xlu0 %442 }
 0x126   : > { %457 = vst.msk [vmem:[%s2500_s11 + $0x30] sm:$0x1] %vm421_vm2, %v443_v40  ;;  %v2534_v41 = vpop.permute.xlu2 %723  ;;  %1882 = vmatpush.xpose.msk.msrb.mxu1 %vm414_vm1, %v443_v40 }
 0x127   : > { %1912 = vst.msk [vmem:[%s2500_s11 + $0x40] sm:$0xff] %vm414_vm1, %v2534_v41 }
 0x12b   : > { %1017 = vrot.lane.b32.xlu1 %v2426_v33, %s2276_s29  ;;  %2100 = vrot.lane.b32.xlu0 %v2542_v42, %s2272_s22 }
 0x12d   : > { %v441_v43 = vpop.permute.xlu0 %440  ;;  %v437_v44 = vpop.permute.xlu1 %436 }
 0x12e   : > { %456 = vst.msk [vmem:[%s2500_s11 + $0x28] sm:$0xff] %vm414_vm1, %v441_v43  ;;  %v2550_v45 = vpop.permute.xlu2 %694  ;;  %1883 = vmatpush.xpose.msk.msrb.mxu1 %vm414_vm1, %v441_v43 }
 0x12f   : > { %454 = vst.msk [vmem:[%s2500_s11 + $0x18] sm:$0xff] %vm414_vm1, %v437_v44 }
 0x130   : > { %1905 = vst.msk [vmem:[%s2391_s20 + $0x40] sm:$0xff] %vm414_vm1, %v2550_v45 }
 0x132   : > { %1884 = vmatpush.xpose.msk.msrb.mxu1 %vm414_vm1, %v439_v37 }
 0x135   : > { %v623_v46 = vpop.permute.xlu1 %622  ;;  %v431_v47 = vpop.permute.xlu0 %430 }
 0x136   : > { %v2559_v48 = vpop.permute.xlu2 %700  ;;  %451 = vst.msk [vmem:[%s2500_s11] sm:$0xff] %vm414_vm1, %v431_v47  ;;  %1885 = vmatpush.xpose.msk.msrb.mxu1 %vm414_vm1, %v437_v44  ;;  %1896 = vmatpush.msk.msra.mxu2 %vm651_vm3, %v623_v46  ;;  %v463_v44 = vld [vmem:[%s3331_s5 + $0x28] sm:$0xff] }
 0x137   : > { %1908 = vst.msk [vmem:[%s2391_s20 + $0x58] sm:$0xff] %vm414_vm1, %v2559_v48  ;;  %2054 = vmatpush.msk.msra.mxu3 %vm651_vm3, %v623_v46 }
 0x138   : > { %664 = vmatpush.msra.mxu2 %v2092_v49 }
 0x139   : > { %2055 = vmatpush.msra.mxu3 %v2092_v49 }
 0x13a   : > { %1886 = vmatpush.xpose.msk.msrb.mxu1 %vm414_vm1, %v435_v36  ;;  %665 = vmatpush.msra.mxu2 %v2093_v50 }
 0x13b   : > { %2056 = vmatpush.msra.mxu3 %v2093_v50  ;;  %v464_v50 = vld [vmem:[%s3331_s5 + $0x30] sm:$0x1] }
 0x13d   : > { %v2570_v51 = vpop.permute.xlu1 %2095  ;;  %v2572_v52 = vpop.permute.xlu0 %725 }
 0x13e   : > { %v2574_v53 = vpop.permute.xlu2 %702  ;;  %1913 = vst.msk [vmem:[%s2500_s11 + $0x48] sm:$0xff] %vm414_vm1, %v2572_v52  ;;  %1887 = vmatpush.xpose.msk.msrb.mxu1 %vm414_vm1, %v433_v38  ;;  %v2097_v25 = vunpack.i.l.bf16 %v2570_v51 }
 0x13f   : > { %1909 = vst.msk [vmem:[%s2391_s20 + $0x60] sm:$0xff] %vm414_vm1, %v2574_v53 }
 0x142   : > { %1888 = vmatpush.xpose.msk.msrb.mxu1 %vm414_vm1, %v431_v47 }
 0x145   : > { %v2584_v54 = vpop.permute.xlu1 %733  ;;  %1889 = vmatmul.msk.f32.vlgmr.msrb.gmra.mxu1 %vm414_vm1, %v2393_v22  ;;  %v2588_v55 = vpop.permute.xlu0 %721 }
 0x146   : > { %v1022_v56 = vpop.permute.xlu2 %1021  ;;  %1917 = vst.msk [vmem:[%s2500_s11 + $0x68] sm:$0x1] %vm421_vm2, %v2584_v54 }
 0x147   : > { %1959 = vst.msk [vmem:[%s2500_s11 + $0x98] sm:$0xff] %vm414_vm1, %v1022_v56 }
 0x148   : > { %1911 = vst.msk [vmem:[%s2500_s11 + $0x38] sm:$0xff] %vm414_vm1, %v2588_v55 }
 0x14d   : > { %v2598_v57 = vpop.permute.xlu1 %731  ;;  %1890 = vmatmul.msk.f32.gmra.mxu1 %vm414_vm1, %v2404_v26  ;;  %v2602_v58 = vpop.permute.xlu0 %696  ;;  %v2098_v26 = vunpack.i.h.bf16 %v2570_v51 }
 0x14e   : > { %v1020_v59 = vpop.permute.xlu2 %1019  ;;  %1916 = vst.msk [vmem:[%s2500_s11 + $0x60] sm:$0xff] %vm414_vm1, %v2598_v57 }
 0x14f   : > { %1958 = vst.msk [vmem:[%s2500_s11 + $0x90] sm:$0xff] %vm414_vm1, %v1020_v59 }
 0x150   : > { %1906 = vst.msk [vmem:[%s2391_s20 + $0x48] sm:$0xff] %vm414_vm1, %v2602_v58 }
 0x155   : > { %v2612_v60 = vpop.permute.xlu1 %729  ;;  %1891 = vmatmul.msk.f32.gmra.mxu1 %vm414_vm1, %v2414_v30  ;;  %v2616_v61 = vpop.permute.xlu0 %1313 }
 0x156   : > { %v2618_v62 = vpop.permute.xlu2 %1301  ;;  %1915 = vst.msk [vmem:[%s2500_s11 + $0x58] sm:$0xff] %vm414_vm1, %v2612_v60 }
 0x157   : > { %1997 = vst.msk [vmem:[%s2500_s11 + $0xa8] sm:$0xff] %vm414_vm1, %v2618_v62 }
 0x158   : > { %2003 = vst.msk [vmem:[%s2500_s11 + $0xd8] sm:$0x1] %vm421_vm2, %v2616_v61 }
 0x15d   : > { %v2629_v63 = vpop.permute.xlu1 %692  ;;  %1892 = vmatmul.msk.f32.gmra.mxu1 %vm414_vm1, %v2426_v33  ;;  %v2633_v0 = vpop.permute.xlu0 %1311 }
 0x15e   : > { %v2635_v1 = vpop.permute.xlu2 %1013  ;;  %1904 = vst.msk [vmem:[%s2391_s20 + $0x38] sm:$0xff] %vm414_vm1, %v2629_v63 }
 0x15f   : > { %1955 = vst.msk [vmem:[%s2500_s11 + $0x78] sm:$0xff] %vm414_vm1, %v2635_v1 }
 0x160   : > { %2002 = vst.msk [vmem:[%s2500_s11 + $0xd0] sm:$0xff] %vm414_vm1, %v2633_v0 }
 0x165   : > { %v2646_v2 = vpop.permute.xlu1 %1309  ;;  %1893 = vmatmul.msk.f32.gmra.mxu1 %vm414_vm1, %v2395_v23  ;;  %v1024_v3 = vpop.permute.xlu0 %1023 }
 0x166   : > { %v983_v4 = vpop.permute.xlu2 %982  ;;  %2001 = vst.msk [vmem:[%s2500_s11 + $0xc8] sm:$0xff] %vm414_vm1, %v2646_v2  ;;  %1968 = vmatpush.xpose.msk.msrb.mxu0 %vm414_vm1, %v1024_v3 }
 0x167   : > { %1947 = vst.msk [vmem:[%s2391_s20 + $0x70] sm:$0xff] %vm414_vm1, %v983_v4 }
 0x168   : > { %1960 = vst.msk [vmem:[%s2500_s11 + $0xa0] sm:$0x1] %vm421_vm2, %v1024_v3 }
 0x16a   : > { %1969 = vmatpush.xpose.msk.msrb.mxu0 %vm414_vm1, %v1022_v56 }
 0x16d   : > { %v2659_v5 = vpop.permute.xlu1 %704  ;;  %1894 = vmatmul.msk.f32.gmra.mxu1 %vm414_vm1, %v2406_v27  ;;  %v2663_v6 = vpop.permute.xlu0 %1305 }
 0x16e   : > { %v728_v7 = vpop.permute.xlu2 %727  ;;  %1910 = vst.msk [vmem:[%s2391_s20 + $0x68] sm:$0x1] %vm421_vm2, %v2659_v5  ;;  %1970 = vmatpush.xpose.msk.msrb.mxu0 %vm414_vm1, %v1020_v59 }
 0x16f   : > { %1914 = vst.msk [vmem:[%s2500_s11 + $0x50] sm:$0xff] %vm414_vm1, %v728_v7 }
 0x170   : > { %1999 = vst.msk [vmem:[%s2500_s11 + $0xb8] sm:$0xff] %vm414_vm1, %v2663_v6 }
 0x175   : > { %v2674_v8 = vpop.permute.xlu1 %1272  ;;  %1895 = vmatmul.msk.f32.gmra.mxu1 %vm414_vm1, %v2416_v31  ;;  %v2678_v9 = vpop.permute.xlu0 %1303 }
 0x176   : > { %v2680_v10 = vpop.permute.xlu2 %698  ;;  %1990 = vst.msk [vmem:[%s2391_s20 + $0xa8] sm:$0xff] %vm414_vm1, %v2674_v8 }
 0x177   : > { %1907 = vst.msk [vmem:[%s2391_s20 + $0x50] sm:$0xff] %vm414_vm1, %v2680_v10 }
 0x178   : > { %1998 = vst.msk [vmem:[%s2500_s11 + $0xb0] sm:$0xff] %vm414_vm1, %v2678_v9 }
 0x17d   : > { %v2691_v11 = vpop.permute.xlu1 %1274  ;;  %v1016_v12 = vpop.permute.xlu0 %1015 }
 0x17e   : > { %v2693_v13 = vpop.permute.xlu2 %1278  ;;  %1991 = vst.msk [vmem:[%s2391_s20 + $0xb0] sm:$0xff] %vm414_vm1, %v2691_v11 }
 0x17f   : > { %1993 = vst.msk [vmem:[%s2391_s20 + $0xc0] sm:$0xff] %vm414_vm1, %v2693_v13 }
 0x180   : > { %1956 = vst.msk [vmem:[%s2500_s11 + $0x80] sm:$0xff] %vm414_vm1, %v1016_v12 }
 0x185   : > { %v985_v14 = vpop.permute.xlu1 %984  ;;  %v1012_v15 = vpop.permute.xlu0 %1011 }
 0x186   : > { %1948 = vst.msk [vmem:[%s2391_s20 + $0x78] sm:$0xff] %vm414_vm1, %v985_v14 }
 0x187   : > { %1954 = vst.msk [vmem:[%s2500_s11 + $0x70] sm:$0xff] %vm414_vm1, %v1012_v15 }
 0x18d   : > { %v2707_v16 = vpop.permute.xlu1 %1280  ;;  %v2709_v17 = vpop.permute.xlu0 %1276 }
 0x18e   : > { %1994 = vst.msk [vmem:[%s2391_s20 + $0xc8] sm:$0xff] %vm414_vm1, %v2707_v16 }
 0x18f   : > { %1992 = vst.msk [vmem:[%s2391_s20 + $0xb8] sm:$0xff] %vm414_vm1, %v2709_v17 }
 0x195   : > { %v2717_v18 = vpop.permute.xlu1 %1307  ;;  %v987_v19 = vpop.permute.xlu0 %986 }
 0x196   : > { %2000 = vst.msk [vmem:[%s2500_s11 + $0xc0] sm:$0xff] %vm414_vm1, %v2717_v18 }
 0x197   : > { %1949 = vst.msk [vmem:[%s2391_s20 + $0x80] sm:$0xff] %vm414_vm1, %v987_v19 }
 0x19d   : > { %v1018_v20 = vpop.permute.xlu1 %1017  ;;  %v2101_v21 = vpop.permute.xlu0 %2100 }
 0x19e   : > { %1957 = vst.msk [vmem:[%s2500_s11 + $0x88] sm:$0xff] %vm414_vm1, %v1018_v20  ;;  %1971 = vmatpush.xpose.msk.msrb.mxu0 %vm414_vm1, %v1018_v20  ;;  %v2102_v22 = vunpack.i.l.bf16 %v2101_v21  ;;  %v2103_v24 = vunpack.i.h.bf16 %v2101_v21 }
 0x1a0   : > { %666 = vmatpush.msra.mxu2 %v2102_v22  ;;  %2057 = vmatpush.msra.mxu3 %v2102_v22 }
 0x1a2   : > { %667 = vmatpush.msra.mxu2 %v2103_v24  ;;  %2058 = vmatpush.msra.mxu3 %v2103_v24 }
 0x1a3   : > { %1972 = vmatpush.xpose.msk.msrb.mxu0 %vm414_vm1, %v1016_v12 }
 0x1a4   : > { %668 = vmatpush.msra.mxu2 %v2097_v25  ;;  %2059 = vmatpush.msra.mxu3 %v2097_v25 }
 0x1a6   : > { %669 = vmatpush.msra.mxu2 %v2098_v26  ;;  %2060 = vmatpush.msra.mxu3 %v2098_v26  ;;  %v459_v26 = vld [vmem:[%s3331_s5 + $0x8] sm:$0xff] }
 0x1a7   : > { %1973 = vmatpush.xpose.msk.msrb.mxu0 %vm414_vm1, %v2635_v1 }
 0x1a8   : > { %1925 = vmatpush.xpose.msk.msrb.mxu3 %vm414_vm1, %v2584_v54 }
 0x1ab   : > { %1974 = vmatpush.xpose.msk.msrb.mxu0 %vm414_vm1, %v1012_v15 }
 0x1ac   : > { %1926 = vmatpush.xpose.msk.msrb.mxu3 %vm414_vm1, %v2598_v57 }
 0x1ae   : > { %1975 = vmatmul.msk.f32.vlgmr.msrb.gmra.mxu0 %vm414_vm1, %v983_v4 }
 0x1b0   : > { %1927 = vmatpush.xpose.msk.msrb.mxu3 %vm414_vm1, %v2612_v60 }
 0x1b4   : > { %1928 = vmatpush.xpose.msk.msrb.mxu3 %vm414_vm1, %v728_v7 }
 0x1b6   : > { %1976 = vmatmul.msk.f32.gmra.mxu0 %vm414_vm1, %v985_v14 }
 0x1b8   : > { %1929 = vmatpush.xpose.msk.msrb.mxu3 %vm414_vm1, %v2572_v52 }
 0x1bc   : > { %1930 = vmatpush.xpose.msk.msrb.mxu3 %vm414_vm1, %v2534_v41 }
 0x1be   : > { %1977 = vmatmul.msk.f32.gmra.mxu0 %vm414_vm1, %v987_v19 }
 0x1c0   : > { %1931 = vmatpush.xpose.msk.msrb.mxu3 %vm414_vm1, %v2588_v55  ;;  %v460_v55 = vld [vmem:[%s3331_s5 + $0x10] sm:$0xff] }
 0x1c2   : > { %v2749_v28 = vpop.f32.mrf.mxu1 }
 0x1ca   : > { %v2751_v29 = vpop.f32.mrf.mxu1 }
 0x1d2   : > { %v516_v30 = vpop.f32.mrf.mxu1 }
 0x1d3   : > { %v517_v56 = vadd.f32 %v516_v30, %v460_v55  ;;  %v514_v30 = vadd.f32 %v2751_v29, %v459_v26 }
 0x1d5   : > { %v538_v57 = vsel %vm531_vm4, %v517_v56, -inf }
 0x1da   : > { %v519_v36 = vpop.f32.mrf.mxu1 }
 0x1db   : > { %v520_v37 = vadd.f32 %v519_v36, %v461_v32  ;;  %v535_v32 = vsel %vm531_vm4, %v514_v30, -inf }
 0x1dd   : > { %v541_v38 = vsel %vm531_vm4, %v520_v37, -inf }
 0x1de   : > { %542 = vmax.xlane.f32.xlu1 %v541_v38  ;;  %v458_v38 = vld [vmem:[%s3331_s5] sm:$0xff] }
 0x1e2   : > { %v522_v40 = vpop.f32.mrf.mxu1 }
 0x1e3   : > { %v523_v41 = vadd.f32 %v522_v40, %v462_v39 }
 0x1e5   : > { %v544_v43 = vsel %vm531_vm4, %v523_v41, -inf }
 0x1e6   : > { %545 = vmax.xlane.f32.xlu2 %v544_v43 }
 0x1ea   : > { %v525_v46 = vpop.f32.mrf.mxu1 }
 0x1eb   : > { %v526_v47 = vadd.f32 %v525_v46, %v463_v44 }
 0x1ed   : > { %v547_v49 = vsel %vm531_vm4, %v526_v47, -inf }
 0x1ee   : > { %548 = vmax.xlane.f32.xlu0 %v547_v49 }
 0x1f2   : > { %v528_v51 = vpop.f32.mrf.mxu1 }
 0x1f3   : > { %v2768_v52 = vadd.f32 %v528_v51, %v464_v50 }
 0x1f5   : > { %v551_v54 = vsel %vm550_vm5, %v2768_v52, -inf }
 0x1f6   : > { %552 = vmax.xlane.f32.xlu2 %v551_v54 }
 0x1f7   : > { %990 = vrot.lane.b32.xlu1 %v2395_v23, %s2278_s12 }
 0x1ff   : > { %994 = vrot.lane.b32.xlu1 %v2416_v31, %s2278_s12 }
 0x202   : > { %1282 = vrot.lane.b32.xlu0 %v2406_v27, %s2277_s30 }
 0x20e   : > { %988 = vrot.lane.b32.xlu2 %v2426_v33, %s2278_s12 }
 0x229   : > { %539 = vmax.xlane.f32.xlu1 %v538_v57 }
 0x251   : > { %v543_v59 = vpop.xlane.xlu1 %542 }
 0x252   : > { %v557_v23 = vsub.f32 %v520_v37, %v543_v59 }
 0x254   : > { %v567_v60 = vmul.f32 1.442695, %v557_v23 }
 0x256   : > { %2151 = vpow2.f32 %v567_v60  ;;  %v1093_v60 = vpop.f32.mrf.mxu0 }
 0x259   : > { %v546_v1 = vpop.xlane.xlu2 %545 }
 0x25a   : > { %v558_v3 = vsub.f32 %v523_v41, %v546_v1  ;;  %v511_v41 = vadd.f32 %v2749_v28, %v458_v38 }
 0x25c   : > { %v2152_v4 = vpop.eup %2151  ;;  %v569_v7 = vmul.f32 1.442695, %v558_v3  ;;  %v532_v29 = vsel %vm531_vm4, %v511_v41, -inf }
 0x25d   : > { %v584_v33 = vsel %vm531_vm4, %v2152_v4, 0.0 }
 0x25e   : > { %2153 = vpow2.f32 %v569_v7  ;;  %585 = vadd.xlane.f32.xlu0 %v584_v33  ;;  %v1096_v33 = vpop.f32.mrf.mxu0 }
 0x261   : > { %v549_v20 = vpop.xlane.xlu0 %548 }
 0x262   : > { %v559_v25 = vsub.f32 %v526_v47, %v549_v20 }
 0x264   : > { %v2154_v12 = vpop.eup %2153 }
 0x265   : > { %v587_v14 = vsel %vm531_vm4, %v2154_v12, 0.0 }
 0x266   : > { %588 = vadd.xlane.f32.xlu2 %v587_v14  ;;  %v1099_v20 = vpop.f32.mrf.mxu0 }
 0x269   : > { %v553_v15 = vpop.xlane.xlu2 %552  ;;  %v991_v19 = vpop.permute.xlu1 %990 }
 0x26a   : > { %1951 = vst.msk [vmem:[%s2391_s20 + $0x90] sm:$0xff] %vm414_vm1, %v991_v19  ;;  %v560_v51 = vsub.f32 %v2768_v52, %v553_v15  ;;  %v1962_v15 = vld [vmem:[%s3331_s5 + $0x78] sm:$0xff] }
 0x26c   : > { %v573_v54 = vmul.f32 1.442695, %v560_v51 }
 0x271   : > { %v989_v21 = vpop.permute.xlu2 %988  ;;  %v995_v22 = vpop.permute.xlu1 %994 }
 0x272   : > { %1950 = vst.msk [vmem:[%s2391_s20 + $0x88] sm:$0xff] %vm414_vm1, %v989_v21  ;;  %992 = vrot.lane.b32.xlu0 %v2406_v27, %s2278_s12  ;;  %1978 = vmatmul.msk.f32.gmra.mxu0 %vm414_vm1, %v989_v21  ;;  %v571_v27 = vmul.f32 1.442695, %v559_v25 }
 0x273   : > { %1953 = vst.msk [vmem:[%s2391_s20 + $0xa0] sm:$0x1] %vm421_vm2, %v995_v22 }
 0x274   : > { %v2795_v24 = vpop.permute.xlu0 %1282  ;;  %2155 = vpow2.f32 %v571_v27 }
 0x275   : > { %1995 = vst.msk [vmem:[%s2391_s20 + $0xd0] sm:$0xff] %vm414_vm1, %v2795_v24 }
 0x27a   : > { %1979 = vmatmul.msk.f32.gmra.mxu0 %vm414_vm1, %v991_v19  ;;  %v2156_v40 = vpop.eup %2155  ;;  %v2861_v19 = vadd.f32 %v1962_v15, %v1096_v33 }
 0x27b   : > { %v590_v43 = vsel %vm531_vm4, %v2156_v40, 0.0 }
 0x27c   : > { %v1117_v21 = vsel %vm531_vm4, %v2861_v19, -inf }
 0x27e   : > { %1284 = vrot.lane.b32.xlu2 %v2416_v31, %s2277_s30  ;;  %s2279_s30 = smov 56  }
 0x29c   : > { %v540_v36 = vpop.xlane.xlu1 %539  ;;  %536 = vmax.xlane.f32.xlu0 %v535_v32 }
 0x29d   : > { %v556_v37 = vsub.f32 %v517_v56, %v540_v36 }
 0x29f   : > { %v565_v39 = vmul.f32 1.442695, %v556_v37  ;;  %v1965_v37 = vld [vmem:[%s3331_s5 + $0x90] sm:$0xff] }
 0x2a1   : > { %2157 = vpow2.f32 %v565_v39 }
 0x2a4   : > { %591 = vadd.xlane.f32.xlu0 %v590_v43  ;;  %v1961_v43 = vld [vmem:[%s3331_s5 + $0x70] sm:$0xff] }
 0x2a7   : > { %v2814_v44 = vpop.eup %2157  ;;  %533 = vmax.xlane.f32.xlu2 %v532_v29 }
 0x2a8   : > { %v581_v46 = vsel %vm531_vm4, %v2814_v44, 0.0 }
 0x2a9   : > { %582 = vadd.xlane.f32.xlu1 %v581_v46  ;;  %v2893_v46 = vadd.f32 %v1961_v43, %v1093_v60 }
 0x2c2   : > { %2105 = vrot.lane.b32.xlu1 %v2436_v34, %s2279_s30 }
 0x2d1   : > { %v586_v47 = vpop.xlane.xlu0 %585 }
 0x2d2   : > { %2159 = vrcp.f32 %v586_v47  ;;  %v1114_v47 = vsel %vm531_vm4, %v2893_v46, -inf }
 0x2d8   : > { %v2160_v28 = vpop.eup %2159 }
 0x2d9   : > { %v589_v49 = vpop.xlane.xlu2 %588  ;;  %v606_v50 = vmul.f32 %v2160_v28, %v2152_v4 }
 0x2da   : > { %2161 = vrcp.f32 %v589_v49  ;;  %v1966_v49 = vld [vmem:[%s3331_s5 + $0x98] sm:$0xff] }
 0x2db   : > { %1900 = vmatmul.msk.f32.vlgmr.msra.gmra.mxu3 %vm531_vm4, %v606_v50  ;;  %2163 = vpow2.f32 %v573_v54 }
 0x2dc   : > { %2011 = vmatpush.xpose.msk.msra.mxu3 %vm414_vm1, %v2616_v61 }
 0x2e0   : > { %v2162_v55 = vpop.eup %2161  ;;  %2012 = vmatpush.xpose.msk.msra.mxu3 %vm414_vm1, %v2633_v0 }
 0x2e1   : > { %v2826_v56 = vpop.permute.xlu2 %1284  ;;  %v607_v57 = vmul.f32 %v2162_v55, %v2154_v12  ;;  %v2837_v61 = vpop.eup %2163 }
 0x2e2   : > { %1996 = vst.msk [vmem:[%s2391_s20 + $0xd8] sm:$0x1] %vm421_vm2, %v2826_v56  ;;  %v593_v0 = vsel %vm550_vm5, %v2837_v61, 0.0 }
 0x2e3   : > { %1901 = vmatmul.msk.f32.gmra.mxu3 %vm531_vm4, %v607_v57 }
 0x2e4   : > { %2013 = vmatpush.xpose.msk.msra.mxu3 %vm414_vm1, %v2646_v2  ;;  %v993_v52 = vpop.permute.xlu0 %992 }
 0x2e5   : > { %1952 = vst.msk [vmem:[%s2391_s20 + $0x98] sm:$0xff] %vm414_vm1, %v993_v52  ;;  %1980 = vmatmul.msk.f32.gmra.mxu0 %vm414_vm1, %v993_v52  ;;  %v1967_v52 = vld [vmem:[%s3331_s5 + $0xa0] sm:$0x1] }
 0x2e8   : > { %2014 = vmatpush.xpose.msk.msra.mxu3 %vm414_vm1, %v2717_v18 }
 0x2ec   : > { %2015 = vmatpush.xpose.msk.msra.mxu3 %vm414_vm1, %v2663_v6  ;;  %594 = vadd.xlane.f32.xlu1 %v593_v0 }
 0x2ed   : > { %1981 = vmatmul.msk.f32.gmra.mxu0 %vm414_vm1, %v995_v22  ;;  %v1963_v22 = vld [vmem:[%s3331_s5 + $0x80] sm:$0xff] }
 0x2ee   : > { %v2868_v25 = vadd.f32 %v1963_v22, %v1099_v20 }
 0x2ef   : > { %v1102_v26 = vpop.f32.mrf.mxu0 }
 0x2f0   : > { %2016 = vmatpush.xpose.msk.msra.mxu3 %vm414_vm1, %v2678_v9  ;;  %v1120_v27 = vsel %vm531_vm4, %v2868_v25, -inf }
 0x2f4   : > { %2017 = vmatpush.xpose.msk.msra.mxu3 %vm414_vm1, %v2618_v62 }
 0x2f7   : > { %v1105_v38 = vpop.f32.mrf.mxu0 }
 0x2f8   : > { %v2886_v39 = vadd.f32 %v1965_v37, %v1105_v38 }
 0x305   : > { %2115 = vrot.lane.b32.xlu1 %v2445_v35, %s2279_s30 }
 0x30f   : > { %v537_v2 = vpop.xlane.xlu0 %536 }
 0x310   : > { %v555_v18 = vsub.f32 %v514_v30, %v537_v2  ;;  %v1964_v30 = vld [vmem:[%s3331_s5 + $0x88] sm:$0xff] }
 0x311   : > { %v2877_v32 = vadd.f32 %v1964_v30, %v1102_v26 }
 0x312   : > { %v563_v59 = vmul.f32 1.442695, %v555_v18 }
 0x313   : > { %v1123_v36 = vsel %vm531_vm4, %v2877_v32, -inf }
 0x314   : > { %2165 = vpow2.f32 %v563_v59 }
 0x317   : > { %v592_v23 = vpop.xlane.xlu0 %591 }
 0x318   : > { %2167 = vrcp.f32 %v592_v23 }
 0x31a   : > { %v2852_v6 = vpop.eup %2165  ;;  %v534_v1 = vpop.xlane.xlu2 %533 }
 0x31b   : > { %v554_v3 = vsub.f32 %v511_v41, %v534_v1  ;;  %v578_v9 = vsel %vm531_vm4, %v2852_v6, 0.0 }
 0x31c   : > { %579 = vadd.xlane.f32.xlu2 %v578_v9  ;;  %v583_v41 = vpop.xlane.xlu1 %582 }
 0x31d   : > { %v561_v4 = vmul.f32 1.442695, %v554_v3 }
 0x31e   : > { %v2168_v62 = vpop.eup %2167 }
 0x31f   : > { %2169 = vpow2.f32 %v561_v4  ;;  %v608_v7 = vmul.f32 %v2168_v62, %v2156_v40  ;;  %v1126_v40 = vsel %vm531_vm4, %v2886_v39, -inf }
 0x321   : > { %1902 = vmatmul.msk.f32.gmra.mxu3 %vm531_vm4, %v608_v7 }
 0x325   : > { %v2170_v12 = vpop.eup %2169 }
 0x326   : > { %v575_v14 = vsel %vm531_vm4, %v2170_v12, 0.0 }
 0x327   : > { %576 = vadd.xlane.f32.xlu0 %v575_v14 }
 0x32f   : > { %1118 = vmax.xlane.f32.xlu1 %v1117_v21 }
 0x334   : > { %2110 = vrot.lane.b32.xlu2 %v2542_v42, %s2279_s30  ;;  %v2106_v29 = vpop.permute.xlu1 %2105 }
 0x337   : > { %1121 = vmax.xlane.f32.xlu1 %v1120_v27 }
 0x33b   : > { %913 = vrot.lane.b32.xlu0 %v2416_v31, %s2279_s30 }
 0x33f   : > { %1124 = vmax.xlane.f32.xlu1 %v1123_v36  ;;  %v1919_v36 = vld [vmem:[%s3331_s5 + $0x40] sm:$0xff] }
 0x347   : > { %1127 = vmax.xlane.f32.xlu1 %v1126_v40 }
 0x35d   : > { %1115 = vmax.xlane.f32.xlu2 %v1114_v47 }
 0x35e   : > { %v2957_v62 = vpop.f32.mrf.mxu3 }
 0x35f   : > { %v595_v28 = vpop.xlane.xlu1 %594 }
 0x360   : > { %2171 = vrcp.f32 %v595_v28  ;;  %v1921_v28 = vld [vmem:[%s3331_s5 + $0x50] sm:$0xff] }
 0x362   : > { %v1108_v50 = vpop.f32.mrf.mxu0 }
 0x363   : > { %v2900_v51 = vadd.f32 %v1966_v49, %v1108_v50 }
 0x365   : > { %v1129_v54 = vsel %vm531_vm4, %v2900_v51, -inf }
 0x366   : > { %v2172_v55 = vpop.eup %2171  ;;  %1130 = vmax.xlane.f32.xlu1 %v1129_v54 }
 0x367   : > { %v609_v57 = vmul.f32 %v2172_v55, %v2837_v61  ;;  %v1922_v55 = vld [vmem:[%s3331_s5 + $0x58] sm:$0xff] }
 0x369   : > { %1903 = vmatmul.msk.f32.gmra.mxu3 %vm531_vm4, %v609_v57 }
 0x36a   : > { %v1111_v0 = vpop.f32.mrf.mxu0 }
 0x36b   : > { %v2909_v2 = vadd.f32 %v1967_v52, %v1111_v0 }
 0x36d   : > { %v1132_v18 = vsel %vm550_vm5, %v2909_v2, -inf }
 0x36e   : > { %1133 = vmax.xlane.f32.xlu0 %v1132_v18  ;;  %v1923_v18 = vld [vmem:[%s3331_s5 + $0x60] sm:$0xff] }
 0x371   : > { %1932 = vmatmul.msk.f32.vlgmr.msrb.gmra.mxu3 %vm414_vm1, %v2629_v63 }
 0x375   : > { %1493 = vrot.lane.b32.xlu2 %v2416_v31, %s2280_s24 }
 0x379   : > { %1933 = vmatmul.msk.f32.gmra.mxu3 %vm414_vm1, %v2550_v45 }
 0x37f   : > { %2120 = vrot.lane.b32.xlu1 %v2436_v34, %s2280_s24 }
 0x381   : > { %1934 = vmatmul.msk.f32.gmra.mxu3 %vm414_vm1, %v2602_v58 }
 0x382   : > { %1203 = vrot.lane.b32.xlu0 %v2416_v31, %s2281_s26 }
 0x389   : > { %1935 = vmatmul.msk.f32.gmra.mxu3 %vm414_vm1, %v2680_v10  ;;  %v2107_v10 = vunpack.i.l.bf16 %v2106_v29 }
 0x38f   : > { %v580_v63 = vpop.xlane.xlu2 %579 }
 0x391   : > { %1936 = vmatmul.msk.f32.gmra.mxu3 %vm414_vm1, %v2559_v48 }
 0x397   : > { %v2111_v23 = vpop.permute.xlu2 %2110 }
 0x398   : > { %v2112_v1 = vunpack.i.l.bf16 %v2111_v23 }
 0x399   : > { %1937 = vmatmul.msk.f32.gmra.mxu3 %vm414_vm1, %v2574_v53 }
 0x39a   : > { %v577_v45 = vpop.xlane.xlu0 %576 }
 0x39b   : > { %2173 = vrcp.f32 %v577_v45 }
 0x39c   : > { %2175 = vrcp.f32 %v580_v63 }
 0x39d   : > { %2177 = vrcp.f32 %v583_v41  ;;  %v1920_v41 = vld [vmem:[%s3331_s5 + $0x48] sm:$0xff] }
 0x3a1   : > { %v2174_v61 = vpop.eup %2173  ;;  %1938 = vmatmul.msk.f32.gmra.mxu3 %vm414_vm1, %v2659_v5  ;;  %v2108_v5 = vunpack.i.h.bf16 %v2106_v29 }
 0x3a2   : > { %v603_v58 = vmul.f32 %v2174_v61, %v2170_v12  ;;  %v2176_v31 = vpop.eup %2175 }
 0x3a3   : > { %v604_v48 = vmul.f32 %v2176_v31, %v2852_v6  ;;  %v2178_v59 = vpop.eup %2177  ;;  %v2113_v6 = vunpack.i.h.bf16 %v2111_v23 }
 0x3a4   : > { %1897 = vmatmul.msk.f32.vlgmr.msra.gmra.mxu2 %vm531_vm4, %v603_v58  ;;  %v605_v60 = vmul.f32 %v2178_v59, %v2814_v44  ;;  %v1924_v58 = vld [vmem:[%s3331_s5 + $0x68] sm:$0x1] }
 0x3a9   : > { %2018 = vmatmul.msk.f32.vlgmr.msra.gmra.mxu3 %vm414_vm1, %v2674_v8  ;;  %v2116_v8 = vpop.permute.xlu1 %2115 }
 0x3aa   : > { %v2117_v3 = vunpack.i.l.bf16 %v2116_v8  ;;  %v2118_v9 = vunpack.i.h.bf16 %v2116_v8 }
 0x3ac   : > { %1898 = vmatmul.msk.f32.gmra.mxu2 %vm531_vm4, %v604_v48 }
 0x3ad   : > { %v914_v53 = vpop.permute.xlu0 %913 }
 0x3ae   : > { %1939 = vmatpush.msk.msrb.mxu2 %vm651_vm3, %v914_v53 }
 0x3b0   : > { %954 = vmatpush.msrb.mxu2 %v2107_v10  ;;  %v2004_v10 = vld [vmem:[%s3331_s5 + $0xa8] sm:$0xff] }
 0x3b1   : > { %2019 = vmatmul.msk.f32.gmra.mxu3 %vm414_vm1, %v2691_v11  ;;  %v2947_v11 = vpop.xlane.xlu1 %1118 }
 0x3b2   : > { %955 = vmatpush.msrb.mxu2 %v2108_v5 }
 0x3b4   : > { %1899 = vmatmul.msk.f32.gmra.mxu2 %vm531_vm4, %v605_v60  ;;  %v2005_v60 = vld [vmem:[%s3331_s5 + $0xb0] sm:$0xff] }
 0x3b5   : > { %956 = vmatpush.msrb.mxu2 %v2112_v1 }
 0x3b7   : > { %957 = vmatpush.msrb.mxu2 %v2113_v6 }
 0x3b9   : > { %958 = vmatpush.msrb.mxu2 %v2117_v3  ;;  %2020 = vmatmul.msk.f32.gmra.mxu3 %vm414_vm1, %v2709_v17  ;;  %v2951_v44 = vpop.xlane.xlu1 %1121  ;;  %v2006_v3 = vld [vmem:[%s3331_s5 + $0xb8] sm:$0xff] }
 0x3bb   : > { %959 = vmatpush.msrb.mxu2 %v2118_v9 }
 0x3c1   : > { %2021 = vmatmul.msk.f32.gmra.mxu3 %vm414_vm1, %v2693_v13  ;;  %v2959_v17 = vpop.xlane.xlu1 %1124  ;;  %v2964_v13 = vpop.f32.mrf.mxu3 }
 0x3c9   : > { %2022 = vmatmul.msk.f32.gmra.mxu3 %vm414_vm1, %v2707_v16  ;;  %v2966_v16 = vpop.xlane.xlu1 %1127  ;;  %v2968_v33 = vpop.f32.mrf.mxu3 }
 0x3d0   : > { %v2953_v4 = vpop.xlane.xlu2 %1115 }
 0x3d1   : > { %2023 = vmatmul.msk.f32.gmra.mxu3 %vm414_vm1, %v2795_v24 }
 0x3d8   : > { %v1494_v7 = vpop.permute.xlu2 %1493 }
 0x3d9   : > { %2024 = vmatmul.msk.f32.gmra.mxu3 %vm414_vm1, %v2826_v56  ;;  %2025 = vmatpush.msk.msra.mxu2 %vm651_vm3, %v1494_v7  ;;  %v2970_v12 = vpop.xlane.xlu1 %1130  ;;  %v1918_v56 = vld [vmem:[%s3331_s5 + $0x38] sm:$0xff] }
 0x3e1   : > { %v2972_v14 = vpop.xlane.xlu0 %1133 }
 0x3ec   : > { %v2974_v24 = vpop.f32.mrf.mxu3 }
 0x3f1   : > { %v2121_v15 = vpop.permute.xlu1 %2120 }
 0x3f2   : > { %v2122_v20 = vunpack.i.l.bf16 %v2121_v15  ;;  %v2123_v21 = vunpack.i.h.bf16 %v2121_v15  ;;  %v2007_v15 = vld [vmem:[%s3331_s5 + $0xc0] sm:$0xff] }
 0x3f4   : > { %v1204_v22 = vpop.permute.xlu0 %1203  ;;  %v803_v26 = vpop.f32.mrf.mxu3  ;;  %1534 = vmatpush.msra.mxu2 %v2122_v20 }
 0x3f5   : > { %v2979_v27 = vadd.f32 %v1918_v56, %v803_v26  ;;  %1982 = vmatpush.msk.msra.mxu1 %vm651_vm3, %v1204_v22  ;;  %v2008_v22 = vld [vmem:[%s3331_s5 + $0xc8] sm:$0xff] }
 0x3f6   : > { %1535 = vmatpush.msra.mxu2 %v2123_v21 }
 0x3f7   : > { %v824_v30 = vsel %vm531_vm4, %v2979_v27, -inf }
 0x3f8   : > { %825 = vmax.xlane.f32.xlu2 %v824_v30 }
 0x3fc   : > { %v806_v37 = vpop.f32.mrf.mxu3 }
 0x3fd   : > { %v2987_v38 = vadd.f32 %v1919_v36, %v806_v37  ;;  %v2009_v37 = vld [vmem:[%s3331_s5 + $0xd0] sm:$0xff] }
 0x3ff   : > { %v827_v40 = vsel %vm531_vm4, %v2987_v38, -inf }
 0x400   : > { %828 = vmax.xlane.f32.xlu0 %v827_v40 }
 0x404   : > { %v809_v43 = vpop.f32.mrf.mxu3 }
 0x405   : > { %v2994_v29 = vadd.f32 %v1920_v41, %v809_v43 }
 0x407   : > { %v830_v47 = vsel %vm531_vm4, %v2994_v29, -inf }
 0x408   : > { %831 = vmax.xlane.f32.xlu1 %v830_v47  ;;  %v2010_v47 = vld [vmem:[%s3331_s5 + $0xd8] sm:$0x1] }
 0x40c   : > { %v812_v49 = vpop.f32.mrf.mxu3 }
 0x40d   : > { %v3001_v50 = vadd.f32 %v1921_v28, %v812_v49 }
 0x40f   : > { %v833_v54 = vsel %vm531_vm4, %v3001_v50, -inf }
 0x410   : > { %834 = vmax.xlane.f32.xlu2 %v833_v54 }
 0x414   : > { %v815_v57 = vpop.f32.mrf.mxu3 }
 0x415   : > { %v3008_v52 = vadd.f32 %v1922_v55, %v815_v57 }
 0x417   : > { %v836_v0 = vsel %vm531_vm4, %v3008_v52, -inf }
 0x418   : > { %837 = vmax.xlane.f32.xlu1 %v836_v0 }
 0x41c   : > { %v818_v45 = vpop.f32.mrf.mxu3 }
 0x41d   : > { %v3015_v63 = vadd.f32 %v1923_v18, %v818_v45 }
 0x41f   : > { %v839_v61 = vsel %vm531_vm4, %v3015_v63, -inf }
 0x420   : > { %840 = vmax.xlane.f32.xlu0 %v839_v61 }
 0x424   : > { %v821_v31 = vpop.f32.mrf.mxu3 }
 0x425   : > { %v3022_v48 = vadd.f32 %v1924_v58, %v821_v31 }
 0x427   : > { %v842_v53 = vsel %vm550_vm5, %v3022_v48, -inf }
 0x428   : > { %843 = vmax.xlane.f32.xlu2 %v842_v53 }
 0x42c   : > { %v1383_v59 = vpop.f32.mrf.mxu3 }
 0x42d   : > { %v3029_v23 = vadd.f32 %v2004_v10, %v1383_v59 }
 0x42f   : > { %v1404_v5 = vsel %vm531_vm4, %v3029_v23, -inf }
 0x430   : > { %1405 = vmax.xlane.f32.xlu0 %v1404_v5 }
 0x431   : > { %2130 = vrot.lane.b32.xlu1 %v2436_v34, %s2281_s26 }
 0x434   : > { %v1386_v1 = vpop.f32.mrf.mxu3 }
 0x435   : > { %v3038_v8 = vadd.f32 %v2005_v60, %v1386_v1 }
 0x437   : > { %v1407_v6 = vsel %vm531_vm4, %v3038_v8, -inf }
 0x438   : > { %1408 = vmax.xlane.f32.xlu0 %v1407_v6 }
 0x43c   : > { %v1389_v9 = vpop.f32.mrf.mxu3 }
 0x43d   : > { %v3045_v7 = vadd.f32 %v2006_v3, %v1389_v9 }
 0x43f   : > { %v1410_v34 = vsel %vm531_vm4, %v3045_v7, -inf }
 0x440   : > { %1411 = vmax.xlane.f32.xlu0 %v1410_v34 }
 0x444   : > { %v1392_v20 = vpop.f32.mrf.mxu3 }
 0x445   : > { %v3052_v56 = vadd.f32 %v2007_v15, %v1392_v20 }
 0x447   : > { %v1413_v21 = vsel %vm531_vm4, %v3052_v56, -inf }
 0x448   : > { %1414 = vmax.xlane.f32.xlu0 %v1413_v21 }
 0x44c   : > { %v1395_v26 = vpop.f32.mrf.mxu3 }
 0x44d   : > { %v3059_v30 = vadd.f32 %v2008_v22, %v1395_v26 }
 0x44f   : > { %v1416_v36 = vsel %vm531_vm4, %v3059_v30, -inf }
 0x450   : > { %1417 = vmax.xlane.f32.xlu0 %v1416_v36 }
 0x454   : > { %v1398_v40 = vpop.f32.mrf.mxu3 }
 0x455   : > { %v3066_v41 = vadd.f32 %v2009_v37, %v1398_v40 }
 0x457   : > { %v1419_v43 = vsel %vm531_vm4, %v3066_v41, -inf }
 0x458   : > { %1420 = vmax.xlane.f32.xlu0 %v1419_v43 }
 0x45c   : > { %v1401_v28 = vpop.f32.mrf.mxu3 }
 0x45d   : > { %v3073_v49 = vadd.f32 %v2010_v47, %v1401_v28 }
 0x45f   : > { %v1422_v54 = vsel %vm550_vm5, %v3073_v49, -inf }
 0x460   : > { %1423 = vmax.xlane.f32.xlu0 %v1422_v54 }
 0x46b   : > { %v826_v55 = vpop.xlane.xlu2 %825 }
 0x46c   : > { %v845_v57 = vsub.f32 %v2979_v27, %v826_v55  ;;  %v1138_v55 = vsub.f32 %v2877_v32, %v2959_v17  ;;  %v1139_v32 = vsub.f32 %v2886_v39, %v2966_v16  ;;  %v1135_v39 = vsub.f32 %v2893_v46, %v2953_v4 }
 0x46d   : > { %v1137_v46 = vsub.f32 %v2868_v25, %v2951_v44 }
 0x46e   : > { %v852_v0 = vmul.f32 1.442695, %v845_v57 }
 0x470   : > { %2179 = vpow2.f32 %v852_v0  ;;  %v1148_v0 = vmul.f32 1.442695, %v1138_v55  ;;  %v1140_v55 = vsub.f32 %v2900_v51, %v2970_v12 }
 0x473   : > { %v829_v18 = vpop.xlane.xlu0 %828 }
 0x474   : > { %v846_v45 = vsub.f32 %v2987_v38, %v829_v18 }
 0x476   : > { %v3079_v61 = vpop.eup %2179  ;;  %v854_v58 = vmul.f32 1.442695, %v846_v45 }
 0x477   : > { %v866_v31 = vsel %vm531_vm4, %v3079_v61, 0.0 }
 0x478   : > { %2181 = vpow2.f32 %v854_v58  ;;  %867 = vadd.xlane.f32.xlu2 %v866_v31 }
 0x47b   : > { %v832_v53 = vpop.xlane.xlu1 %831 }
 0x47c   : > { %v847_v10 = vsub.f32 %v2994_v29, %v832_v53 }
 0x47e   : > { %v3084_v59 = vpop.eup %2181  ;;  %v856_v5 = vmul.f32 1.442695, %v847_v10 }
 0x47f   : > { %v869_v27 = vsel %vm531_vm4, %v3084_v59, 0.0 }
 0x480   : > { %2183 = vpow2.f32 %v856_v5  ;;  %870 = vadd.xlane.f32.xlu1 %v869_v27  ;;  %v1150_v5 = vmul.f32 1.442695, %v1139_v32 }
 0x483   : > { %v835_v9 = vpop.xlane.xlu2 %834 }
 0x484   : > { %v848_v20 = vsub.f32 %v3001_v50, %v835_v9 }
 0x486   : > { %v3088_v38 = vpop.eup %2183  ;;  %v858_v21 = vmul.f32 1.442695, %v848_v20 }
 0x487   : > { %v872_v60 = vsel %vm531_vm4, %v3088_v38, 0.0 }
 0x488   : > { %873 = vadd.xlane.f32.xlu0 %v872_v60  ;;  %2185 = vpow2.f32 %v858_v21 }
 0x48b   : > { %v838_v29 = vpop.xlane.xlu1 %837 }
 0x48c   : > { %v849_v26 = vsub.f32 %v3008_v52, %v838_v29  ;;  %v1142_v29 = vmul.f32 1.442695, %v1135_v39 }
 0x48e   : > { %v860_v37 = vmul.f32 1.442695, %v849_v26  ;;  %v3102_v43 = vpop.eup %2185 }
 0x48f   : > { %v875_v50 = vsel %vm531_vm4, %v3102_v43, 0.0 }
 0x490   : > { %2125 = vrot.lane.b32.xlu2 %v2542_v42, %s2280_s24  ;;  %2187 = vpow2.f32 %v860_v37 }
 0x493   : > { %v841_v1 = vpop.xlane.xlu0 %840 }
 0x494   : > { %v850_v28 = vsub.f32 %v3015_v63, %v841_v1 }
 0x496   : > { %v862_v52 = vmul.f32 1.442695, %v850_v28 }
 0x499   : > { %2135 = vrot.lane.b32.xlu1 %v2445_v35, %s2280_s24  ;;  %s2282_s24 = smov 8  }
 0x49b   : > { %v844_v57 = vpop.xlane.xlu2 %843 }
 0x49c   : > { %2140 = vrot.lane.b32.xlu0 %v2542_v42, %s2281_s26  ;;  %v851_v63 = vsub.f32 %v3022_v48, %v844_v57  ;;  %v1152_v57 = vmul.f32 1.442695, %v1140_v55 }
 0x49e   : > { %v864_v31 = vmul.f32 1.442695, %v851_v63 }
 0x4a3   : > { %v2131_v6 = vpop.permute.xlu1 %2130  ;;  %v1406_v3 = vpop.xlane.xlu0 %1405 }
 0x4a4   : > { %v2132_v34 = vunpack.i.l.bf16 %v2131_v6  ;;  %v2133_v15 = vunpack.i.h.bf16 %v2131_v6  ;;  %v1425_v42 = vsub.f32 %v3029_v23, %v1406_v3  ;;  %v3109_v23 = vpop.eup %2187 }
 0x4a5   : > { %v878_v45 = vsel %vm531_vm4, %v3109_v23, 0.0 }
 0x4a6   : > { %1244 = vmatpush.msra.mxu1 %v2132_v34  ;;  %v1432_v54 = vmul.f32 1.442695, %v1425_v42  ;;  %v1146_v34 = vmul.f32 1.442695, %v1137_v46 }
 0x4a8   : > { %1245 = vmatpush.msra.mxu1 %v2133_v15 }
 0x4ab   : > { %v1409_v22 = vpop.xlane.xlu0 %1408 }
 0x4ac   : > { %v1426_v36 = vsub.f32 %v3038_v8, %v1409_v22 }
 0x4ae   : > { %v1434_v47 = vmul.f32 1.442695, %v1426_v36 }
 0x4b0   : > { %2189 = vpow2.f32 %v1434_v47 }
 0x4b1   : > { %2191 = vpow2.f32 %v1432_v54 }
 0x4b2   : > { %2193 = vpow2.f32 %v862_v52 }
 0x4b3   : > { %v1412_v40 = vpop.xlane.xlu0 %1411  ;;  %2195 = vpow2.f32 %v1148_v0 }
 0x4b4   : > { %2197 = vpow2.f32 %v864_v31  ;;  %v1427_v26 = vsub.f32 %v3045_v7, %v1412_v40 }
 0x4b5   : > { %2199 = vpow2.f32 %v1150_v5 }
 0x4b6   : > { %v3111_v18 = vpop.eup %2189  ;;  %2201 = vpow2.f32 %v1142_v29  ;;  %v1436_v44 = vmul.f32 1.442695, %v1427_v26  ;;  %v1141_v29 = vsub.f32 %v2909_v2, %v2972_v14 }
 0x4b7   : > { %v3118_v17 = vpop.eup %2191  ;;  %v1449_v58 = vsel %vm531_vm4, %v3111_v18, 0.0  ;;  %2203 = vpow2.f32 %v1146_v34 }
 0x4b8   : > { %v3122_v10 = vpop.eup %2193  ;;  %v1446_v48 = vsel %vm531_vm4, %v3118_v17, 0.0 }
 0x4b9   : > { %876 = vadd.xlane.f32.xlu2 %v875_v50  ;;  %v3126_v27 = vpop.eup %2195  ;;  %v881_v16 = vsel %vm531_vm4, %v3122_v10, 0.0 }
 0x4ba   : > { %v1165_v60 = vsel %vm531_vm4, %v3126_v27, 0.0  ;;  %v3136_v6 = vpop.eup %2197 }
 0x4bb   : > { %v1415_v8 = vpop.xlane.xlu0 %1414  ;;  %v3138_v3 = vpop.eup %2199  ;;  %v884_v4 = vsel %vm550_vm5, %v3136_v6, 0.0 }
 0x4bc   : > { %v1168_v9 = vsel %vm531_vm4, %v3138_v3, 0.0  ;;  %v3147_v21 = vpop.eup %2201 }
 0x4bd   : > { %v1156_v25 = vsel %vm531_vm4, %v3147_v21, 0.0  ;;  %v3154_v36 = vpop.eup %2203 }
 0x4be   : > { %v1162_v7 = vsel %vm531_vm4, %v3154_v36, 0.0 }
 0x4c1   : > { %879 = vadd.xlane.f32.xlu2 %v878_v45 }
 0x4c3   : > { %1450 = vadd.xlane.f32.xlu1 %v1449_v58  ;;  %v1418_v53 = vpop.xlane.xlu0 %1417 }
 0x4c6   : > { %1447 = vadd.xlane.f32.xlu0 %v1446_v48 }
 0x4c9   : > { %882 = vadd.xlane.f32.xlu2 %v881_v16 }
 0x4cb   : > { %1166 = vadd.xlane.f32.xlu1 %v1165_v60  ;;  %v3134_v1 = vpop.xlane.xlu0 %1420 }
 0x4d1   : > { %885 = vadd.xlane.f32.xlu2 %v884_v4 }
 0x4d3   : > { %1169 = vadd.xlane.f32.xlu1 %v1168_v9  ;;  %v1424_v15 = vpop.xlane.xlu0 %1423 }
 0x4d4   : > { %v1431_v20 = vsub.f32 %v3073_v49, %v1424_v15  ;;  %v1428_v49 = vsub.f32 %v3052_v56, %v1415_v8 }
 0x4d6   : > { %v1444_v22 = vmul.f32 1.442695, %v1431_v20  ;;  %v1438_v40 = vmul.f32 1.442695, %v1428_v49 }
 0x4d8   : > { %2205 = vpow2.f32 %v1444_v22 }
 0x4d9   : > { %1157 = vadd.xlane.f32.xlu2 %v1156_v25  ;;  %2207 = vpow2.f32 %v1436_v44 }
 0x4da   : > { %2145 = vrot.lane.b32.xlu0 %v2445_v35, %s2281_s26  ;;  %2209 = vpow2.f32 %v1438_v40  ;;  %v1429_v35 = vsub.f32 %v3059_v30, %v1418_v53  ;;  %v1136_v30 = vsub.f32 %v2861_v19, %v2947_v11  ;;  %v1430_v11 = vsub.f32 %v3066_v41, %v3134_v1  ;;  %s2283_s26 = smov 16  }
 0x4db   : > { %v1154_v1 = vmul.f32 1.442695, %v1141_v29 }
 0x4dc   : > { %v1440_v54 = vmul.f32 1.442695, %v1429_v35  ;;  %v1144_v51 = vmul.f32 1.442695, %v1136_v30  ;;  %v1442_v48 = vmul.f32 1.442695, %v1430_v11 }
 0x4de   : > { %v3156_v37 = vpop.eup %2205 }
 0x4df   : > { %v1464_v42 = vsel %vm550_vm5, %v3156_v37, 0.0  ;;  %v3163_v47 = vpop.eup %2207 }
 0x4e0   : > { %1465 = vadd.xlane.f32.xlu1 %v1464_v42  ;;  %v1452_v28 = vsel %vm531_vm4, %v3163_v47, 0.0  ;;  %v3168_v50 = vpop.eup %2209 }
 0x4e1   : > { %1163 = vadd.xlane.f32.xlu2 %v1162_v7  ;;  %v1455_v52 = vsel %vm531_vm4, %v3168_v50, 0.0 }
 0x4e9   : > { %1453 = vadd.xlane.f32.xlu2 %v1452_v28 }
 0x4eb   : > { %v868_v56 = vpop.xlane.xlu2 %867 }
 0x4ec   : > { %2211 = vrcp.f32 %v868_v56 }
 0x4ed   : > { %2213 = vpow2.f32 %v1440_v54 }
 0x4f1   : > { %1456 = vadd.xlane.f32.xlu2 %v1455_v52 }
 0x4f2   : > { %v2212_v8 = vpop.eup %2211 }
 0x4f3   : > { %v871_v0 = vpop.xlane.xlu1 %870  ;;  %v2126_v63 = vpop.permute.xlu2 %2125  ;;  %v894_v45 = vmul.f32 %v2212_v8, %v3079_v61 }
 0x4f4   : > { %2215 = vrcp.f32 %v871_v0  ;;  %v2127_v32 = vunpack.i.l.bf16 %v2126_v63  ;;  %v3177_v58 = vpop.eup %2213  ;;  %v2128_v12 = vunpack.i.h.bf16 %v2126_v63 }
 0x4f5   : > { %1940 = vmatmul.msk.f32.vlgmr.msrb.gmra.mxu2 %vm531_vm4, %v894_v45  ;;  %2217 = vpow2.f32 %v1152_v57  ;;  %v1458_v31 = vsel %vm531_vm4, %v3177_v58, 0.0 }
 0x4f6   : > { %1536 = vmatpush.msra.mxu2 %v2127_v32  ;;  %2219 = vpow2.f32 %v1144_v51  ;;  %v3218_v51 = vpop.f32.mrf.mxu2 }
 0x4f8   : > { %1537 = vmatpush.msra.mxu2 %v2128_v12 }
 0x4f9   : > { %1459 = vadd.xlane.f32.xlu2 %v1458_v31 }
 0x4fa   : > { %v2216_v19 = vpop.eup %2215 }
 0x4fb   : > { %v874_v61 = vpop.xlane.xlu0 %873  ;;  %v895_v53 = vmul.f32 %v2216_v19, %v3084_v59  ;;  %v3185_v5 = vpop.eup %2217 }
 0x4fc   : > { %2221 = vrcp.f32 %v874_v61  ;;  %v3188_v39 = vpop.eup %2219  ;;  %v1171_v16 = vsel %vm531_vm4, %v3185_v5, 0.0 }
 0x4fd   : > { %1941 = vmatmul.msk.f32.gmra.mxu2 %vm531_vm4, %v895_v53  ;;  %2223 = vpow2.f32 %v1442_v48  ;;  %v1159_v41 = vsel %vm531_vm4, %v3188_v39, 0.0 }
 0x4fe   : > { %2225 = vpow2.f32 %v1154_v1 }
 0x501   : > { %1172 = vadd.xlane.f32.xlu2 %v1171_v16 }
 0x502   : > { %v2222_v60 = vpop.eup %2221 }
 0x503   : > { %v896_v59 = vmul.f32 %v2222_v60, %v3088_v38  ;;  %v3198_v46 = vpop.eup %2223 }
 0x504   : > { %1160 = vadd.xlane.f32.xlu0 %v1159_v41  ;;  %v1461_v9 = vsel %vm531_vm4, %v3198_v46, 0.0  ;;  %v3202_v20 = vpop.eup %2225 }
 0x505   : > { %1942 = vmatmul.msk.f32.gmra.mxu2 %vm531_vm4, %v896_v59  ;;  %v1174_v22 = vsel %vm550_vm5, %v3202_v20, 0.0 }
 0x50b   : > { %v2136_v4 = vpop.permute.xlu1 %2135 }
 0x50c   : > { %v2137_v34 = vunpack.i.l.bf16 %v2136_v4  ;;  %1462 = vadd.xlane.f32.xlu0 %v1461_v9  ;;  %v2138_v2 = vunpack.i.h.bf16 %v2136_v4 }
 0x50e   : > { %v2141_v14 = vpop.permute.xlu0 %2140  ;;  %1538 = vmatpush.msra.mxu2 %v2137_v34 }
 0x50f   : > { %v2142_v15 = vunpack.i.l.bf16 %v2141_v14  ;;  %v2143_v38 = vunpack.i.h.bf16 %v2141_v14 }
 0x510   : > { %1539 = vmatpush.msra.mxu2 %v2138_v2 }
 0x511   : > { %1246 = vmatpush.msra.mxu1 %v2142_v15 }
 0x513   : > { %1247 = vmatpush.msra.mxu1 %v2143_v38 }
 0x514   : > { %1175 = vadd.xlane.f32.xlu0 %v1174_v22 }
 0x52c   : > { %v877_v26 = vpop.xlane.xlu2 %876 }
 0x52d   : > { %2227 = vrcp.f32 %v877_v26 }
 0x533   : > { %v2228_v25 = vpop.eup %2227 }
 0x534   : > { %v880_v44 = vpop.xlane.xlu2 %879  ;;  %v897_v49 = vmul.f32 %v2228_v25, %v3102_v43 }
 0x535   : > { %2229 = vrcp.f32 %v880_v44 }
 0x536   : > { %1943 = vmatmul.msk.f32.gmra.mxu2 %vm531_vm4, %v897_v49  ;;  %v1451_v57 = vpop.xlane.xlu1 %1450 }
 0x539   : > { %v1448_v28 = vpop.xlane.xlu0 %1447 }
 0x53b   : > { %v2230_v42 = vpop.eup %2229 }
 0x53c   : > { %v883_v7 = vpop.xlane.xlu2 %882  ;;  %v898_v40 = vmul.f32 %v2230_v42, %v3109_v23 }
 0x53d   : > { %2231 = vrcp.f32 %v883_v7 }
 0x53e   : > { %1944 = vmatmul.msk.f32.gmra.mxu2 %vm531_vm4, %v898_v40  ;;  %v1167_v16 = vpop.xlane.xlu1 %1166 }
 0x543   : > { %v2232_v35 = vpop.eup %2231 }
 0x544   : > { %v886_v54 = vpop.xlane.xlu2 %885  ;;  %v899_v56 = vmul.f32 %v2232_v35, %v3122_v10 }
 0x545   : > { %2233 = vrcp.f32 %v886_v54 }
 0x546   : > { %1945 = vmatmul.msk.f32.gmra.mxu2 %vm531_vm4, %v899_v56  ;;  %2235 = vrcp.f32 %v1448_v28  ;;  %v1170_v59 = vpop.xlane.xlu1 %1169 }
 0x54b   : > { %v2234_v55 = vpop.eup %2233 }
 0x54c   : > { %v2146_v43 = vpop.permute.xlu0 %2145  ;;  %v1158_v52 = vpop.xlane.xlu2 %1157  ;;  %v900_v8 = vmul.f32 %v2234_v55, %v3136_v6 }
 0x54d   : > { %v2147_v30 = vunpack.i.l.bf16 %v2146_v43  ;;  %2237 = vrcp.f32 %v1158_v52  ;;  %v2148_v23 = vunpack.i.h.bf16 %v2146_v43  ;;  %v2236_v0 = vpop.eup %2235 }
 0x54e   : > { %1946 = vmatmul.msk.f32.gmra.mxu2 %vm531_vm4, %v900_v8  ;;  %2239 = vrcp.f32 %v1451_v57  ;;  %v1474_v10 = vmul.f32 %v2236_v0, %v3118_v17  ;;  %v1672_v57 = vld [vmem:[%s3329_s3 + $0x18] sm:$0xff] }
 0x54f   : > { %1248 = vmatpush.msra.mxu1 %v2147_v30  ;;  %1711 = vmatpush.msra.mxu0 %v1672_v57 }
 0x550   : > { %2061 = vmatpush.msrb.mxu2 %v1672_v57 }
 0x551   : > { %1249 = vmatpush.msra.mxu1 %v2148_v23 }
 0x553   : > { %v2238_v63 = vpop.eup %2237 }
 0x554   : > { %v1184_v45 = vmul.f32 %v2238_v63, %v3147_v21  ;;  %v1164_v32 = vpop.xlane.xlu2 %1163  ;;  %v2240_v6 = vpop.eup %2239 }
 0x555   : > { %v1475_v31 = vmul.f32 %v2240_v6, %v3111_v18  ;;  %v3223_v21 = vpop.f32.mrf.mxu2  ;;  %v1670_v6 = vld [vmem:[%s3329_s3 + $0x8] sm:$0xff] }
 0x556   : > { %1983 = vmatmul.msk.f32.vlgmr.msra.gmra.mxu1 %vm531_vm4, %v1184_v45  ;;  %2026 = vmatmul.msk.f32.vlgmr.msra.gmra.mxu2 %vm531_vm4, %v1474_v10 }
 0x55c   : > { %v1454_v12 = vpop.xlane.xlu2 %1453 }
 0x55d   : > { %2241 = vrcp.f32 %v1454_v12  ;;  %v3228_v18 = vpop.f32.mrf.mxu2  ;;  %v1669_v12 = vld [vmem:[%s3329_s3] sm:$0xff] }
 0x55e   : > { %2027 = vmatmul.msk.f32.gmra.mxu2 %vm531_vm4, %v1475_v31 }
 0x563   : > { %v2242_v19 = vpop.eup %2241 }
 0x564   : > { %v1457_v11 = vpop.xlane.xlu2 %1456  ;;  %v1476_v17 = vmul.f32 %v2242_v19, %v3163_v47 }
 0x565   : > { %2243 = vrcp.f32 %v1457_v11 }
 0x566   : > { %2028 = vmatmul.msk.f32.gmra.mxu2 %vm531_vm4, %v1476_v17 }
 0x56b   : > { %v2244_v61 = vpop.eup %2243 }
 0x56c   : > { %v1460_v53 = vpop.xlane.xlu2 %1459  ;;  %v1477_v48 = vmul.f32 %v2244_v61, %v3168_v50 }
 0x56d   : > { %2245 = vrcp.f32 %v1460_v53 }
 0x56e   : > { %2029 = vmatmul.msk.f32.gmra.mxu2 %vm531_vm4, %v1477_v48 }
 0x573   : > { %v2246_v60 = vpop.eup %2245 }
 0x574   : > { %v1478_v29 = vmul.f32 %v2246_v60, %v3177_v58  ;;  %v1466_v58 = vpop.xlane.xlu1 %1465 }
 0x576   : > { %2030 = vmatmul.msk.f32.gmra.mxu2 %vm531_vm4, %v1478_v29 }
 0x577   : > { %v1161_v47 = vpop.xlane.xlu0 %1160 }
 0x578   : > { %2247 = vrcp.f32 %v1161_v47  ;;  %v961_v41 = vpop.f32.mrf.mxu2 }
 0x579   : > { %1569 = vrot.lane.b32.xlu2 %v961_v41, %s2282_s24  ;;  %2249 = vrcp.f32 %v1164_v32  ;;  %v1671_v32 = vld [vmem:[%s3329_s3 + $0x10] sm:$0xff] }
 0x57a   : > { %1712 = vmatpush.msra.mxu0 %v1671_v32  ;;  %2062 = vmatpush.msrb.mxu2 %v1671_v32 }
 0x57c   : > { %1713 = vmatpush.msra.mxu0 %v1670_v6  ;;  %2063 = vmatpush.msrb.mxu2 %v1670_v6 }
 0x57e   : > { %v2248_v1 = vpop.eup %2247  ;;  %1714 = vmatpush.msra.mxu0 %v1669_v12  ;;  %2064 = vmatpush.msrb.mxu2 %v1669_v12 }
 0x57f   : > { %v1463_v50 = vpop.xlane.xlu0 %1462  ;;  %v1185_v4 = vmul.f32 %v2248_v1, %v3188_v39  ;;  %v2250_v34 = vpop.eup %2249 }
 0x580   : > { %2251 = vrcp.f32 %v1463_v50  ;;  %v964_v9 = vpop.f32.mrf.mxu2  ;;  %v1186_v14 = vmul.f32 %v2250_v34, %v3154_v36  ;;  %v1173_v36 = vpop.xlane.xlu2 %1172 }
 0x581   : > { %1984 = vmatmul.msk.f32.gmra.mxu1 %vm531_vm4, %v1185_v4  ;;  %1571 = vrot.lane.b32.xlu2 %v964_v9, %s2282_s24  ;;  %2253 = vrcp.f32 %v1167_v16 }
 0x582   : > { %2255 = vrcp.f32 %v1466_v58 }
 0x583   : > { %2257 = vrcp.f32 %v1170_v59 }
 0x584   : > { %2259 = vrcp.f32 %v1173_v36 }
 0x586   : > { %v2252_v2 = vpop.eup %2251 }
 0x587   : > { %v1479_v15 = vmul.f32 %v2252_v2, %v3198_v46  ;;  %v2254_v39 = vpop.eup %2253  ;;  %v1176_v49 = vpop.xlane.xlu0 %1175 }
 0x588   : > { %v967_v38 = vpop.f32.mrf.mxu2  ;;  %v2256_v22 = vpop.eup %2255  ;;  %v1187_v26 = vmul.f32 %v2254_v39, %v3126_v27  ;;  %2261 = vrcp.f32 %v1176_v49 }
 0x589   : > { %1985 = vmatmul.msk.f32.gmra.mxu1 %vm531_vm4, %v1186_v14  ;;  %2031 = vmatmul.msk.f32.gmra.mxu2 %vm531_vm4, %v1479_v15  ;;  %v1480_v25 = vmul.f32 %v2256_v22, %v3156_v37  ;;  %v2258_v46 = vpop.eup %2257 }
 0x58a   : > { %1573 = vrot.lane.b32.xlu2 %v967_v38, %s2282_s24  ;;  %v1188_v44 = vmul.f32 %v2258_v46, %v3138_v3  ;;  %v2260_v42 = vpop.eup %2259 }
 0x58b   : > { %v1189_v7 = vmul.f32 %v2260_v42, %v3185_v5 }
 0x58e   : > { %v2262_v27 = vpop.eup %2261 }
 0x58f   : > { %v1190_v37 = vmul.f32 %v2262_v27, %v3202_v20 }
 0x591   : > { %1986 = vmatmul.msk.f32.gmra.mxu1 %vm531_vm4, %v1187_v26  ;;  %2032 = vmatmul.msk.f32.gmra.mxu2 %vm531_vm4, %v1480_v25 }
 0x599   : > { %1987 = vmatmul.msk.f32.gmra.mxu1 %vm531_vm4, %v1188_v44 }
 0x5a1   : > { %1988 = vmatmul.msk.f32.gmra.mxu1 %vm531_vm4, %v1189_v7 }
 0x5a9   : > { %1989 = vmatmul.msk.f32.gmra.mxu1 %vm531_vm4, %v1190_v37 }
 0x5b9   : > { %v970_v40 = vpop.f32.mrf.mxu2 }
 0x5ba   : > { %1575 = vrot.lane.b32.xlu2 %v970_v40, %s2282_s24 }
 0x5c1   : > { %v973_v35 = vpop.f32.mrf.mxu2 }
 0x5c2   : > { %1577 = vrot.lane.b32.xlu2 %v973_v35, %s2282_s24  ;;  %v2150_v35 = vld [vmem:[%s3330_s4] ss:$0 sm:$0xff] }
 0x5c9   : > { %v976_v3 = vpop.f32.mrf.mxu2 }
 0x5d1   : > { %v979_v28 = vpop.f32.mrf.mxu2 }
 0x5d3   : > { %v1251_v54 = vpop.f32.mrf.mxu1  ;;  %v1570_v31 = vpop.permute.xlu2 %1569 }
 0x5d4   : > { %1597 = vrot.lane.b32.xlu1 %v1251_v54, %s2283_s26  ;;  %v1646_v53 = vsel %vm414_vm1, %v3218_v51, %v1570_v31 }
 0x5d9   : > { %v1541_v5 = vpop.f32.mrf.mxu2 }
 0x5db   : > { %v1572_v11 = vpop.permute.xlu2 %1571 }
 0x5dc   : > { %1581 = vrot.lane.b32.xlu1 %v979_v28, %s2282_s24  ;;  %v1647_v41 = vsel %vm414_vm1, %v3223_v21, %v1572_v11 }
 0x5e1   : > { %v1544_v56 = vpop.f32.mrf.mxu2 }
 0x5e4   : > { %1627 = vrot.lane.b32.xlu1 %v1544_v56, %s2284_s17  ;;  %v1574_v60 = vpop.permute.xlu2 %1573 }
 0x5e5   : > { %v1648_v4 = vsel %vm414_vm1, %v3228_v18, %v1574_v60 }
 0x5e9   : > { %v1547_v20 = vpop.f32.mrf.mxu2 }
 0x5ec   : > { %1629 = vrot.lane.b32.xlu1 %v1547_v20, %s2284_s17 }
 0x5f1   : > { %v1550_v55 = vpop.f32.mrf.mxu2 }
 0x5f4   : > { %1631 = vrot.lane.b32.xlu1 %v1550_v55, %s2284_s17 }
 0x5f9   : > { %v1553_v43 = vpop.f32.mrf.mxu2 }
 0x5fa   : > { %1633 = vrot.lane.b32.xlu2 %v1553_v43, %s2284_s17 }
 0x5fe   : > { %v1254_v52 = vpop.f32.mrf.mxu1 }
 0x5ff   : > { %1599 = vrot.lane.b32.xlu0 %v1254_v52, %s2283_s26 }
 0x602   : > { %1579 = vrot.lane.b32.xlu2 %v976_v3, %s2282_s24 }
 0x606   : > { %v1257_v8 = vpop.f32.mrf.mxu1 }
 0x607   : > { %1625 = vrot.lane.b32.xlu0 %v1541_v5, %s2284_s17 }
 0x60c   : > { %v1556_v30 = vpop.f32.mrf.mxu2 }
 0x60e   : > { %v1260_v23 = vpop.f32.mrf.mxu1 }
 0x60f   : > { %1601 = vrot.lane.b32.xlu0 %v1257_v8, %s2283_s26 }
 0x614   : > { %v1559_v0 = vpop.f32.mrf.mxu2  ;;  %v1576_v50 = vpop.permute.xlu2 %1575 }
 0x615   : > { %1637 = vrot.lane.b32.xlu1 %v1559_v0, %s2284_s17  ;;  %v1649_v14 = vsel %vm414_vm1, %v2957_v62, %v1576_v50 }
 0x616   : > { %v1263_v63 = vpop.f32.mrf.mxu1 }
 0x617   : > { %1603 = vrot.lane.b32.xlu0 %v1260_v23, %s2283_s26 }
 0x61c   : > { %v1578_v21 = vpop.permute.xlu2 %1577 }
 0x61d   : > { %1635 = vrot.lane.b32.xlu1 %v1556_v30, %s2284_s17  ;;  %v1650_v26 = vsel %vm414_vm1, %v2964_v13, %v1578_v21 }
 0x61e   : > { %v1266_v10 = vpop.f32.mrf.mxu1 }
 0x61f   : > { %1605 = vrot.lane.b32.xlu0 %v1263_v63, %s2283_s26 }
 0x626   : > { %v1269_v45 = vpop.f32.mrf.mxu1 }
 0x627   : > { %1609 = vrot.lane.b32.xlu0 %v1269_v45, %s2283_s26 }
 0x62f   : > { %1607 = vrot.lane.b32.xlu0 %v1266_v10, %s2283_s26 }
 0x646   : > { %v1598_v19 = vpop.permute.xlu1 %1597 }
 0x647   : > { %v1654_v48 = vsel %vm1653_vm6, %v1646_v53, %v1598_v19 }
 0x64e   : > { %v1582_v61 = vpop.permute.xlu1 %1581 }
 0x64f   : > { %v1652_v46 = vsel %vm414_vm1, %v2974_v24, %v1582_v61 }
 0x654   : > { %v1634_v18 = vpop.permute.xlu2 %1633 }
 0x656   : > { %v1628_v47 = vpop.permute.xlu1 %1627 }
 0x65c   : > { %v1580_v7 = vpop.permute.xlu2 %1579 }
 0x65d   : > { %v1651_v13 = vsel %vm414_vm1, %v2968_v33, %v1580_v7 }
 0x65e   : > { %v1630_v9 = vpop.permute.xlu1 %1629 }
 0x666   : > { %v1632_v38 = vpop.permute.xlu1 %1631 }
 0x671   : > { %v1600_v17 = vpop.permute.xlu0 %1599 }
 0x672   : > { %v1655_v59 = vsel %vm1653_vm6, %v1647_v41, %v1600_v17 }
 0x673   : > { %v1663_v51 = vsel %vm1661_vm8, %v1655_v59, %v1628_v47 }
 0x679   : > { %v1626_v16 = vpop.permute.xlu0 %1625 }
 0x67a   : > { %v1662_v29 = vsel %vm1661_vm8, %v1654_v48, %v1626_v16 }
 0x67b   : > { %2033 = vmatmul.msk.f32.vlgmr.msra.gmra.mxu0 %vm1677_vm7, %v1662_v29 }
 0x681   : > { %v1602_v1 = vpop.permute.xlu0 %1601 }
 0x682   : > { %v1656_v58 = vsel %vm1653_vm6, %v1648_v4, %v1602_v1 }
 0x683   : > { %2034 = vmatmul.msk.f32.gmra.mxu0 %vm1677_vm7, %v1663_v51  ;;  %v1664_v2 = vsel %vm1661_vm8, %v1656_v58, %v1630_v9 }
 0x687   : > { %v1638_v36 = vpop.permute.xlu1 %1637 }
 0x689   : > { %v1604_v34 = vpop.permute.xlu0 %1603 }
 0x68a   : > { %v1657_v15 = vsel %vm1653_vm6, %v1649_v14, %v1604_v34 }
 0x68b   : > { %2035 = vmatmul.msk.f32.gmra.mxu0 %vm1677_vm7, %v1664_v2  ;;  %v1665_v22 = vsel %vm1661_vm8, %v1657_v15, %v1632_v38 }
 0x68f   : > { %v1636_v37 = vpop.permute.xlu1 %1635 }
 0x691   : > { %v1606_v39 = vpop.permute.xlu0 %1605 }
 0x692   : > { %v1658_v25 = vsel %vm1653_vm6, %v1650_v26, %v1606_v39 }
 0x693   : > { %2036 = vmatmul.msk.f32.gmra.mxu0 %vm1677_vm7, %v1665_v22  ;;  %v1666_v49 = vsel %vm1661_vm8, %v1658_v25, %v1634_v18 }
 0x699   : > { %v1610_v62 = vpop.permute.xlu0 %1609 }
 0x69a   : > { %v1660_v44 = vsel %vm1653_vm6, %v1652_v46, %v1610_v62 }
 0x69b   : > { %v1668_v42 = vsel %vm1661_vm8, %v1660_v44, %v1638_v36  ;;  %2037 = vmatmul.msk.f32.gmra.mxu0 %vm1677_vm7, %v1666_v49 }
 0x69c   : > { %2039 = vmatmul.msk.f32.vlgmr.msrb.gmra.mxu2 %vm1677_vm7, %v1668_v42 }
 0x6a1   : > { %v1608_v27 = vpop.permute.xlu0 %1607 }
 0x6a2   : > { %v1659_v40 = vsel %vm1653_vm6, %v1651_v13, %v1608_v27 }
 0x6a3   : > { %v1667_v24 = vsel %vm1661_vm8, %v1659_v40, %v1636_v37 }
 0x6a4   : > { %2038 = vmatmul.msk.f32.gmra.mxu0 %vm1677_vm7, %v1667_v24 }
 0x6f8   : > { %v1716_v3 = vpop.f32.mrf.mxu0 }
 0x6f9   : > { %v1717_v28 = vadd.f32 %v2150_v35, %v1716_v3 }
 0x6fb   : > { %1737 = vst.msk [vmem:[%s320_s13] sm:$0xff] %vm1677_vm7, %v1717_v28 }
 0x700   : > { %v1719_v33 = vpop.f32.mrf.mxu0 }
 0x701   : > { %v1720_v54 = vadd.f32 %v2150_v35, %v1719_v33 }
 0x703   : > { %1738 = vst.msk [vmem:[%s320_s13 + $0x8] sm:$0xff] %vm1677_vm7, %v1720_v54 }
 0x708   : > { %v1722_v5 = vpop.f32.mrf.mxu0 }
 0x709   : > { %v1723_v56 = vadd.f32 %v2150_v35, %v1722_v5 }
 0x70b   : > { %1739 = vst.msk [vmem:[%s320_s13 + $0x10] sm:$0xff] %vm1677_vm7, %v1723_v56 }
 0x710   : > { %v1725_v20 = vpop.f32.mrf.mxu0 }
 0x711   : > { %v1726_v55 = vadd.f32 %v2150_v35, %v1725_v20 }
 0x713   : > { %1740 = vst.msk [vmem:[%s320_s13 + $0x18] sm:$0xff] %vm1677_vm7, %v1726_v55 }
 0x718   : > { %v1728_v43 = vpop.f32.mrf.mxu0 }
 0x719   : > { %v1729_v52 = vadd.f32 %v2150_v35, %v1728_v43 }
 0x71b   : > { %1741 = vst.msk [vmem:[%s320_s13 + $0x20] sm:$0xff] %vm1677_vm7, %v1729_v52 }
 0x71f   : > { %v1734_v8 = vpop.f32.mrf.mxu2 }
 0x720   : > { %v1735_v30 = vadd.f32 %v2150_v35, %v1734_v8 }
 0x721   : > { %v1731_v23 = vpop.f32.mrf.mxu0 }
 0x722   : > { %1744 = vst.msk [vmem:[%s320_s13 + $0x30] sm:$0x1] %vm1743_vm9, %v1735_v30  ;;  %v1732_v57 = vadd.f32 %v2150_v35, %v1731_v23 }
 0x724   : > { %1742 = vst.msk [vmem:[%s320_s13 + $0x28] sm:$0xff] %vm1677_vm7, %v1732_v57 }
 0x725 PF: > { %s19_s27 = sadd.s32 1, %s2269_s27  }
 0x726   : > { %p16_p4 = scmp.ge.s32.totalorder %s19_s27, 4  }
 0x728   :  { %18 = sbr.rel (!%p16_p4) target bundleno = 1 (0x1), region = 107 }

</bundles_post_ra>
